<compile_context>
chip_gen: v7x
topology: tpu7x:2x2x1
jax: 0.10.0
libtpu: 0.0.40
codegen_flags: <defaults>
</compile_context>

<pallas_src>
import functools

import jax
import jax.numpy as jnp
from jax import lax
from jax.experimental import pallas as pl
from jax.experimental.pallas import tpu as pltpu  # noqa: F401  (TPU backend)


# ----------------------------------------------------------------------------
# small helpers
# ----------------------------------------------------------------------------
def _layer_norm(x, g, b, eps=1e-5):
    mu = jnp.mean(x, axis=-1, keepdims=True)
    var = jnp.mean((x - mu) ** 2, axis=-1, keepdims=True)
    return (x - mu) * lax.rsqrt(var + eps) * g + b


def _layer_norm_noaffine(x, eps=1e-6):
    mu = jnp.mean(x, axis=-1, keepdims=True)
    var = jnp.mean((x - mu) ** 2, axis=-1, keepdims=True)
    return (x - mu) * lax.rsqrt(var + eps)


def pooled_patch_mean(img, kd=16, kh=16, kw=8):
    """Mean over all non-overlapping (kd,kh,kw) patches of img (B,1,D,H,W).

    Returns (B, kd*kh*kw) in Conv3d-weight flatten order.  This is the
    pool-before-matmul simplification: exact because conv + the per-node
    stand-in projection are linear in the patch values.
    """
    B, C, D, H, W = img.shape
    assert C == 1
    od, oh, ow = D // kd, H // kh, W // kw
    x = img[:, 0].reshape(B, od, kd, oh, kh, ow, kw)
    x = jnp.mean(x, axis=(1, 3, 5))            # (B, kd, kh, kw), f32 reduce
    return x.reshape(B, kd * kh * kw)


# ----------------------------------------------------------------------------
# ONE fused kernel: image matmul + tabular MLP + 2x DiT blocks + to_logits
# ----------------------------------------------------------------------------
def fused_forward_kernel(img_pool_ref, x_tab_ref,
                         wimg_ref, bimg_ref,
                         dw1_ref, db1_ref, dw2_ref, db2_ref,
                         modw_ref, modb_ref,
                         wv_ref, bv_ref, wo_ref, bo_ref,
                         mw1_ref, mb1_ref, mw2_ref, mb2_ref,
                         lng_ref, lnb_ref, wl_ref, bl_ref,
                         out_ref, *, n_blocks, dim):
    # --- image branch: single 128-lane-dense bf16 MXU matmul -----------------
    # wimg is block-diagonal [mri | pet]; img_pool = [mri_pool | pet_pool].
    # Bias added post-pool (exact for the linear stand-in).
    # TODO(synk): real RandomWalkPE + graph-Mamba is nonlinear -> pool-first
    # must be reverted when the stand-in is replaced.
    cond = jnp.dot(img_pool_ref[...], wimg_ref[...],
                   preferred_element_type=jnp.float32) + bimg_ref[...]   # (B, 2*dim2)

    # --- GCondNet stand-in: plain 2-layer MLP over raw tabular features ------
    # TODO(synk): GCondNet conditions its MLP weights with per-feature GNNs.
    xt = x_tab_ref[...].astype(jnp.bfloat16)                             # (B, n_in)
    h = jnp.dot(xt, dw1_ref[...], preferred_element_type=jnp.float32) + db1_ref[...]
    h = jnp.maximum(h, 0.0)                                              # ReLU, f32
    x = jnp.dot(h.astype(jnp.bfloat16), dw2_ref[...],
                preferred_element_type=jnp.float32) + db2_ref[...]       # (B, dim)

    # --- adaLN conditioning: SiLU (f32) + ONE fused modulation matmul --------
    c_act = cond * jax.nn.sigmoid(cond)                                  # SiLU, f32
    mods = jnp.dot(c_act.astype(jnp.bfloat16), modw_ref[...],
                   preferred_element_type=jnp.float32) + modb_ref[...]   # (B, n_blocks*6*dim)

    # --- DiT decoder blocks (static unroll) -----------------------------------
    for blk in range(n_blocks):
        base = blk * 6 * dim
        sl = lambda i: mods[:, base + i * dim: base + (i + 1) * dim]     # static lane slice
        shift_msa, scale_msa, gate_msa = sl(0), sl(1), sl(2)
        shift_mlp, scale_mlp, gate_mlp = sl(3), sl(4), sl(5)

        # attention branch: single token -> softmax == 1 -> exactly Wo(Wv(x)).
        xm = _layer_norm_noaffine(x) * (1.0 + scale_msa) + shift_msa
        a = jnp.dot(xm.astype(jnp.bfloat16), wv_ref[blk, :, :],
                    preferred_element_type=jnp.float32) + bv_ref[blk, :, :]
        a = jnp.dot(a.astype(jnp.bfloat16), wo_ref[blk, :, :],
                    preferred_element_type=jnp.float32) + bo_ref[blk, :, :]
        x = x + gate_msa * a

        # MLP branch (DiT uses tanh-approx GELU; jax.nn.gelu default matches).
        xm = _layer_norm_noaffine(x) * (1.0 + scale_mlp) + shift_mlp
        m = jnp.dot(xm.astype(jnp.bfloat16), mw1_ref[blk, :, :],
                    preferred_element_type=jnp.float32) + mb1_ref[blk, :, :]
        m = jax.nn.gelu(m)                                               # f32
        m = jnp.dot(m.astype(jnp.bfloat16), mw2_ref[blk, :, :],
                    preferred_element_type=jnp.float32) + mb2_ref[blk, :, :]
        x = x + gate_mlp * m

    # --- to_logits: LayerNorm + Linear ---------------------------------------
    y = _layer_norm(x, lng_ref[...], lnb_ref[...])
    out_ref[...] = jnp.dot(y.astype(jnp.bfloat16), wl_ref[...],
                           preferred_element_type=jnp.float32) + bl_ref[...]


def fused_forward(img_pool, x_tab, params):
    B = x_tab.shape[0]
    n_blocks, dim = params["wv"].shape[0], params["wv"].shape[1]
    dim_out = params["wl"].shape[1]
    kernel = functools.partial(fused_forward_kernel, n_blocks=n_blocks, dim=dim)
    # Single-program fused kernel: all operands are tiny, whole-array VMEM
    # blocks (default BlockSpec).  See TODO at top for the production-size
    # tiled / megacore variant.
    return pl.pallas_call(
        kernel,
        out_shape=jax.ShapeDtypeStruct((B, dim_out), jnp.float32),
    )(img_pool, x_tab,
      params["w_img"], params["b_img"],
      params["dnn_w1"], params["dnn_b1"], params["dnn_w2"], params["dnn_b2"],
      params["mod_w"], params["mod_b"],
      params["wv"], params["bv"], params["wo"], params["bo"],
      params["mlp_w1"], params["mlp_b1"], params["mlp_w2"], params["mlp_b2"],
      params["lnf_g"], params["lnf_b"], params["wl"], params["bl"])


# ----------------------------------------------------------------------------
# Parameter init (deterministic, synthetic)
# ----------------------------------------------------------------------------
def init_params(key, *, categories, num_continuous, dim, dim2, dim_out, heads,
                cross_ff_multi, patch_k, dnn_hidden=128, n_blocks=2):
    assert all(n > 0 for n in categories), 'number of each category must be positive'
    assert len(categories) + num_continuous > 0
    assert dim % heads == 0  # module constraint; heads are inert for a 1-token sequence
    ks = iter(jax.random.split(key, 32))

    def nrm(shape, scale=0.02):
        return (scale * jax.random.normal(next(ks), shape)).astype(jnp.float32)

    n_in = len(categories) + num_continuous
    d_cross = 2 * dim2
    mlp_hidden = cross_ff_multi * dim
    d_mod = n_blocks * 6 * dim

    def fused_image_weights():
        # Conv3d(1,1,(16,16,8)) weight flattened (K,1) + stand-in node projection
        # (1,dim2), algebraically fused:  W_eff = conv_w @ proj_w,
        #                                 b_eff = conv_b @ proj_w + proj_b.
        conv_w = nrm((patch_k, 1))
        conv_b = nrm((1, 1))
        proj_w = nrm((1, dim2), 1.0)
        proj_b = nrm((1, dim2))
        return conv_w @ proj_w, conv_b @ proj_w + proj_b      # (K, dim2), (1, dim2)

    wm, bm = fused_image_weights()
    wp, bp = fused_image_weights()
    # Block-diagonal [mri | pet] column layout -> one 128-lane-dense matmul.
    w_img = jnp.zeros((2 * patch_k, 2 * dim2), jnp.float32)
    w_img = w_img.at[:patch_k, :dim2].set(wm).at[patch_k:, dim2:].set(wp)
    b_img = jnp.concatenate([bm, bp], axis=1)                 # (1, 2*dim2) f32

    return dict(
        # image branch (bf16 MXU operand, f32 bias)
        w_img=w_img.astype(jnp.bfloat16), b_img=b_img,
        # GCondNet stand-in MLP
        dnn_w1=nrm((n_in, dnn_hidden), 0.1).astype(jnp.bfloat16),
        dnn_b1=jnp.zeros((1, dnn_hidden), jnp.float32),
        dnn_w2=nrm((dnn_hidden, dim), 0.1).astype(jnp.bfloat16),
        dnn_b2=jnp.zeros((1, dim), jnp.float32),
        # fused adaLN modulation for ALL blocks: (2*dim2, n_blocks*6*dim)
        mod_w=nrm((d_cross, d_mod), 0.1).astype(jnp.bfloat16),
        mod_b=jnp.zeros((1, d_mod), jnp.float32),
        # 2x DiT blocks, weights stacked along a leading block axis; q/k of the
        # single-token self-attention are mathematically inert and omitted.
        wv=nrm((n_blocks, dim, dim), 0.1).astype(jnp.bfloat16),
        bv=jnp.zeros((n_blocks, 1, dim), jnp.float32),
        wo=nrm((n_blocks, dim, dim), 0.1).astype(jnp.bfloat16),
        bo=jnp.zeros((n_blocks, 1, dim), jnp.float32),
        mlp_w1=nrm((n_blocks, dim, mlp_hidden), 0.1).astype(jnp.bfloat16),
        mlp_b1=jnp.zeros((n_blocks, 1, mlp_hidden), jnp.float32),
        mlp_w2=nrm((n_blocks, mlp_hidden, dim), 0.1).astype(jnp.bfloat16),
        mlp_b2=jnp.zeros((n_blocks, 1, dim), jnp.float32),
        # to_logits
        lnf_g=jnp.ones((1, dim), jnp.float32),
        lnf_b=jnp.zeros((1, dim), jnp.float32),
        wl=nrm((dim, dim_out), 0.1).astype(jnp.bfloat16),
        bl=jnp.zeros((1, dim_out), jnp.float32),
    )


# ----------------------------------------------------------------------------
# Forward pass (mirrors Graph_mamba13_.forward)
# ----------------------------------------------------------------------------
def graph_mamba13_forward(params, x_categ, x_numer, mri_img, pet_img):
    # --- image branches: pool-before-matmul (exact under the linear stand-in).
    # The raw volumes are read exactly once by this reduction; no patch matrix
    # is materialized in HBM and the kernel sees only a (B, 2K) pooled row.
    mri_pool = pooled_patch_mean(mri_img)                     # (B, K) f32
    pet_pool = pooled_patch_mean(pet_img)                     # (B, K) f32
    img_pool = jnp.concatenate([mri_pool, pet_pool], axis=1).astype(jnp.bfloat16)

    # --- tabular features: raw categorical codes + continuous (as in ref) ----
    x_tab = jnp.concatenate([x_categ.astype(jnp.float32), x_numer], axis=1)

    # --- single fused pallas_call: image matmul + MLP + DiT blocks + logits --
    return fused_forward(img_pool, x_tab, params)             # (B, dim_out)


# ----------------------------------------------------------------------------
if __name__ == "__main__":
    B = 2
    categories = (3, 5, 2)
    num_continuous = 4
    dim = 32
    dim2 = 64            # stand-in for the graph model's 256 pooled channels
    heads = 4
    dim_out = 1
    cross_ff_multi = 2
    KD, KH, KW = 16, 16, 8
    D, H, W = 32, 32, 16              # -> 2*2*2 = 8 conv patches / graph nodes
    patch_k = KD * KH * KW

    root = jax.random.PRNGKey(0)
    k_param, k_cat, k_num, k_mri, k_pet = jax.random.split(root, 5)

    params = init_params(k_param, categories=categories,
                         num_continuous=num_continuous, dim=dim, dim2=dim2,
                         dim_out=dim_out, heads=heads,
                         cross_ff_multi=cross_ff_multi, patch_k=patch_k)

    cat_keys = jax.random.split(k_cat, len(categories))
    x_categ = jnp.concatenate(
        [jax.random.randint(cat_keys[i], (B, 1), 0, categories[i], dtype=jnp.int32)
         for i in range(len(categories))], axis=1)                        # (B, 3)
    x_numer = jax.random.normal(k_num, (B, num_continuous), jnp.float32)  # (B, 4)
    mri_img = jax.random.normal(k_mri, (B, 1, D, H, W), jnp.float32)      # NCDHW
    pet_img = jax.random.normal(k_pet, (B, 1, D, H, W), jnp.float32)      # NCDHW

    logits = graph_mamba13_forward(params, x_categ, x_numer, mri_img, pet_img)
    logits = jax.block_until_ready(logits)
    assert logits.shape == (B, dim_out)
    print("KERNEL_OK")
</pallas_src>

<mosaic_0001>
module attributes {stable_mosaic.version = 11 : i64} {
  func.func @fused_forward_kernel(%arg0: memref<2x4096xbf16, #tpu.memory_space<vmem>>, %arg1: memref<2x7xf32, #tpu.memory_space<vmem>>, %arg2: memref<4096x128xbf16, #tpu.memory_space<vmem>>, %arg3: memref<1x128xf32, #tpu.memory_space<vmem>>, %arg4: memref<7x128xbf16, #tpu.memory_space<vmem>>, %arg5: memref<1x128xf32, #tpu.memory_space<vmem>>, %arg6: memref<128x32xbf16, #tpu.memory_space<vmem>>, %arg7: memref<1x32xf32, #tpu.memory_space<vmem>>, %arg8: memref<128x384xbf16, #tpu.memory_space<vmem>>, %arg9: memref<1x384xf32, #tpu.memory_space<vmem>>, %arg10: memref<2x32x32xbf16, #tpu.memory_space<vmem>>, %arg11: memref<2x1x32xf32, #tpu.memory_space<vmem>>, %arg12: memref<2x32x32xbf16, #tpu.memory_space<vmem>>, %arg13: memref<2x1x32xf32, #tpu.memory_space<vmem>>, %arg14: memref<2x32x64xbf16, #tpu.memory_space<vmem>>, %arg15: memref<2x1x64xf32, #tpu.memory_space<vmem>>, %arg16: memref<2x64x32xbf16, #tpu.memory_space<vmem>>, %arg17: memref<2x1x32xf32, #tpu.memory_space<vmem>>, %arg18: memref<1x32xf32, #tpu.memory_space<vmem>>, %arg19: memref<1x32xf32, #tpu.memory_space<vmem>>, %arg20: memref<32x1xbf16, #tpu.memory_space<vmem>>, %arg21: memref<1x1xf32, #tpu.memory_space<vmem>>, %arg22: memref<2x1xf32, #tpu.memory_space<vmem>>) attributes {dimension_semantics = [], scalar_prefetch = 0 : i64, scratch_operands = 0 : i64, tpu.core_type = #tpu.core_type<tc>} {
    %c0 = arith.constant 0 : index
    %c0_0 = arith.constant 0 : index
    %0 = vector.load %arg0[%c0, %c0_0] : memref<2x4096xbf16, #tpu.memory_space<vmem>>, vector<2x4096xbf16>
    %c0_1 = arith.constant 0 : index
    %c0_2 = arith.constant 0 : index
    %1 = vector.load %arg2[%c0_1, %c0_2] : memref<4096x128xbf16, #tpu.memory_space<vmem>>, vector<4096x128xbf16>
    %cst = arith.constant dense<0.000000e+00> : vector<2x128xf32>
    %2 = tpu.matmul %0, %1, %cst {dimension_numbers = #tpu.dot_dimension_numbers<[1], [0], [0], [1], [0, 0, 1, 1], [], []>} : vector<2x4096xbf16>, vector<4096x128xbf16>, vector<2x128xf32> -> vector<2x128xf32>
    %c0_3 = arith.constant 0 : index
    %c0_4 = arith.constant 0 : index
    %3 = vector.load %arg3[%c0_3, %c0_4] : memref<1x128xf32, #tpu.memory_space<vmem>>, vector<1x128xf32>
    %4 = vector.broadcast %3 : vector<1x128xf32> to vector<2x128xf32>
    %5 = arith.addf %2, %4 : vector<2x128xf32>
    %c0_5 = arith.constant 0 : index
    %c0_6 = arith.constant 0 : index
    %6 = vector.load %arg1[%c0_5, %c0_6] : memref<2x7xf32, #tpu.memory_space<vmem>>, vector<2x7xf32>
    %7 = arith.truncf %6 : vector<2x7xf32> to vector<2x7xbf16>
    %c0_7 = arith.constant 0 : index
    %c0_8 = arith.constant 0 : index
    %8 = vector.load %arg4[%c0_7, %c0_8] : memref<7x128xbf16, #tpu.memory_space<vmem>>, vector<7x128xbf16>
    %cst_9 = arith.constant dense<0.000000e+00> : vector<2x128xf32>
    %9 = tpu.matmul %7, %8, %cst_9 {dimension_numbers = #tpu.dot_dimension_numbers<[1], [0], [0], [1], [0, 0, 1, 1], [], []>} : vector<2x7xbf16>, vector<7x128xbf16>, vector<2x128xf32> -> vector<2x128xf32>
    %c0_10 = arith.constant 0 : index
    %c0_11 = arith.constant 0 : index
    %10 = vector.load %arg5[%c0_10, %c0_11] : memref<1x128xf32, #tpu.memory_space<vmem>>, vector<1x128xf32>
    %11 = vector.broadcast %10 : vector<1x128xf32> to vector<2x128xf32>
    %12 = arith.addf %9, %11 : vector<2x128xf32>
    %cst_12 = arith.constant 0.000000e+00 : f32
    %13 = vector.broadcast %cst_12 : f32 to vector<2x128xf32>
    %14 = arith.maximumf %12, %13 : vector<2x128xf32>
    %15 = arith.truncf %14 : vector<2x128xf32> to vector<2x128xbf16>
    %c0_13 = arith.constant 0 : index
    %c0_14 = arith.constant 0 : index
    %16 = vector.load %arg6[%c0_13, %c0_14] : memref<128x32xbf16, #tpu.memory_space<vmem>>, vector<128x32xbf16>
    %cst_15 = arith.constant dense<0.000000e+00> : vector<2x32xf32>
    %17 = tpu.matmul %15, %16, %cst_15 {dimension_numbers = #tpu.dot_dimension_numbers<[1], [0], [0], [1], [0, 0, 1, 1], [], []>} : vector<2x128xbf16>, vector<128x32xbf16>, vector<2x32xf32> -> vector<2x32xf32>
    %c0_16 = arith.constant 0 : index
    %c0_17 = arith.constant 0 : index
    %18 = vector.load %arg7[%c0_16, %c0_17] : memref<1x32xf32, #tpu.memory_space<vmem>>, vector<1x32xf32>
    %19 = vector.broadcast %18 : vector<1x32xf32> to vector<2x32xf32>
    %20 = arith.addf %17, %19 : vector<2x32xf32>
    %21 = arith.negf %5 : vector<2x128xf32>
    %22 = math.exp %21 : vector<2x128xf32>
    %cst_18 = arith.constant 1.000000e+00 : f32
    %23 = vector.broadcast %cst_18 : f32 to vector<2x128xf32>
    %24 = arith.addf %23, %22 : vector<2x128xf32>
    %25 = arith.divf %23, %24 : vector<2x128xf32>
    %26 = arith.mulf %5, %25 : vector<2x128xf32>
    %27 = arith.truncf %26 : vector<2x128xf32> to vector<2x128xbf16>
    %c0_19 = arith.constant 0 : index
    %c0_20 = arith.constant 0 : index
    %28 = vector.load %arg8[%c0_19, %c0_20] : memref<128x384xbf16, #tpu.memory_space<vmem>>, vector<128x384xbf16>
    %cst_21 = arith.constant dense<0.000000e+00> : vector<2x384xf32>
    %29 = tpu.matmul %27, %28, %cst_21 {dimension_numbers = #tpu.dot_dimension_numbers<[1], [0], [0], [1], [0, 0, 1, 1], [], []>} : vector<2x128xbf16>, vector<128x384xbf16>, vector<2x384xf32> -> vector<2x384xf32>
    %c0_22 = arith.constant 0 : index
    %c0_23 = arith.constant 0 : index
    %30 = vector.load %arg9[%c0_22, %c0_23] : memref<1x384xf32, #tpu.memory_space<vmem>>, vector<1x384xf32>
    %31 = vector.broadcast %30 : vector<1x384xf32> to vector<2x384xf32>
    %32 = arith.addf %29, %31 : vector<2x384xf32>
    %33 = vector.extract_strided_slice %32 {offsets = [0, 0], sizes = [2, 32], strides = [1, 1]} : vector<2x384xf32> to vector<2x32xf32>
    %34 = vector.extract_strided_slice %32 {offsets = [0, 32], sizes = [2, 32], strides = [1, 1]} : vector<2x384xf32> to vector<2x32xf32>
    %35 = vector.extract_strided_slice %32 {offsets = [0, 64], sizes = [2, 32], strides = [1, 1]} : vector<2x384xf32> to vector<2x32xf32>
    %36 = vector.extract_strided_slice %32 {offsets = [0, 96], sizes = [2, 32], strides = [1, 1]} : vector<2x384xf32> to vector<2x32xf32>
    %37 = vector.extract_strided_slice %32 {offsets = [0, 128], sizes = [2, 32], strides = [1, 1]} : vector<2x384xf32> to vector<2x32xf32>
    %38 = vector.extract_strided_slice %32 {offsets = [0, 160], sizes = [2, 32], strides = [1, 1]} : vector<2x384xf32> to vector<2x32xf32>
    %cst_24 = arith.constant dense<0.000000e+00> : vector<2xf32>
    %39 = vector.multi_reduction <add>, %20, %cst_24 [1] : vector<2x32xf32> to vector<2xf32>
    %40 = vector.shape_cast %39 : vector<2xf32> to vector<2x1xf32>
    %cst_25 = arith.constant 3.200000e+01 : f32
    %41 = vector.broadcast %cst_25 : f32 to vector<2x1xf32>
    %42 = arith.divf %40, %41 : vector<2x1xf32>
    %43 = vector.broadcast %42 : vector<2x1xf32> to vector<2x32xf32>
    %44 = arith.subf %20, %43 : vector<2x32xf32>
    %45 = arith.mulf %44, %44 : vector<2x32xf32>
    %cst_26 = arith.constant dense<0.000000e+00> : vector<2xf32>
    %46 = vector.multi_reduction <add>, %45, %cst_26 [1] : vector<2x32xf32> to vector<2xf32>
    %47 = vector.shape_cast %46 : vector<2xf32> to vector<2x1xf32>
    %cst_27 = arith.constant 3.200000e+01 : f32
    %48 = vector.broadcast %cst_27 : f32 to vector<2x1xf32>
    %49 = arith.divf %47, %48 : vector<2x1xf32>
    %50 = vector.broadcast %42 : vector<2x1xf32> to vector<2x32xf32>
    %51 = arith.subf %20, %50 : vector<2x32xf32>
    %cst_28 = arith.constant 9.99999997E-7 : f32
    %52 = vector.broadcast %cst_28 : f32 to vector<2x1xf32>
    %53 = arith.addf %49, %52 : vector<2x1xf32>
    %54 = math.rsqrt %53 : vector<2x1xf32>
    %55 = vector.broadcast %54 : vector<2x1xf32> to vector<2x32xf32>
    %56 = arith.mulf %51, %55 : vector<2x32xf32>
    %cst_29 = arith.constant 1.000000e+00 : f32
    %57 = vector.broadcast %cst_29 : f32 to vector<2x32xf32>
    %58 = arith.addf %57, %34 : vector<2x32xf32>
    %59 = arith.mulf %56, %58 : vector<2x32xf32>
    %60 = arith.addf %59, %33 : vector<2x32xf32>
    %61 = arith.truncf %60 : vector<2x32xf32> to vector<2x32xbf16>
    %c0_30 = arith.constant 0 : index
    %c0_31 = arith.constant 0 : index
    %c0_32 = arith.constant 0 : index
    %62 = vector.load %arg10[%c0_30, %c0_31, %c0_32] : memref<2x32x32xbf16, #tpu.memory_space<vmem>>, vector<1x32x32xbf16>
    %63 = vector.shape_cast %62 : vector<1x32x32xbf16> to vector<32x32xbf16>
    %cst_33 = arith.constant dense<0.000000e+00> : vector<2x32xf32>
    %64 = tpu.matmul %61, %63, %cst_33 {dimension_numbers = #tpu.dot_dimension_numbers<[1], [0], [0], [1], [0, 0, 1, 1], [], []>} : vector<2x32xbf16>, vector<32x32xbf16>, vector<2x32xf32> -> vector<2x32xf32>
    %c0_34 = arith.constant 0 : index
    %c0_35 = arith.constant 0 : index
    %c0_36 = arith.constant 0 : index
    %65 = vector.load %arg11[%c0_34, %c0_35, %c0_36] : memref<2x1x32xf32, #tpu.memory_space<vmem>>, vector<1x1x32xf32>
    %66 = vector.shape_cast %65 : vector<1x1x32xf32> to vector<1x32xf32>
    %67 = vector.broadcast %66 : vector<1x32xf32> to vector<2x32xf32>
    %68 = arith.addf %64, %67 : vector<2x32xf32>
    %69 = arith.truncf %68 : vector<2x32xf32> to vector<2x32xbf16>
    %c0_37 = arith.constant 0 : index
    %c0_38 = arith.constant 0 : index
    %c0_39 = arith.constant 0 : index
    %70 = vector.load %arg12[%c0_37, %c0_38, %c0_39] : memref<2x32x32xbf16, #tpu.memory_space<vmem>>, vector<1x32x32xbf16>
    %71 = vector.shape_cast %70 : vector<1x32x32xbf16> to vector<32x32xbf16>
    %cst_40 = arith.constant dense<0.000000e+00> : vector<2x32xf32>
    %72 = tpu.matmul %69, %71, %cst_40 {dimension_numbers = #tpu.dot_dimension_numbers<[1], [0], [0], [1], [0, 0, 1, 1], [], []>} : vector<2x32xbf16>, vector<32x32xbf16>, vector<2x32xf32> -> vector<2x32xf32>
    %c0_41 = arith.constant 0 : index
    %c0_42 = arith.constant 0 : index
    %c0_43 = arith.constant 0 : index
    %73 = vector.load %arg13[%c0_41, %c0_42, %c0_43] : memref<2x1x32xf32, #tpu.memory_space<vmem>>, vector<1x1x32xf32>
    %74 = vector.shape_cast %73 : vector<1x1x32xf32> to vector<1x32xf32>
    %75 = vector.broadcast %74 : vector<1x32xf32> to vector<2x32xf32>
    %76 = arith.addf %72, %75 : vector<2x32xf32>
    %77 = arith.mulf %35, %76 : vector<2x32xf32>
    %78 = arith.addf %20, %77 : vector<2x32xf32>
    %cst_44 = arith.constant dense<0.000000e+00> : vector<2xf32>
    %79 = vector.multi_reduction <add>, %78, %cst_44 [1] : vector<2x32xf32> to vector<2xf32>
    %80 = vector.shape_cast %79 : vector<2xf32> to vector<2x1xf32>
    %cst_45 = arith.constant 3.200000e+01 : f32
    %81 = vector.broadcast %cst_45 : f32 to vector<2x1xf32>
    %82 = arith.divf %80, %81 : vector<2x1xf32>
    %83 = vector.broadcast %82 : vector<2x1xf32> to vector<2x32xf32>
    %84 = arith.subf %78, %83 : vector<2x32xf32>
    %85 = arith.mulf %84, %84 : vector<2x32xf32>
    %cst_46 = arith.constant dense<0.000000e+00> : vector<2xf32>
    %86 = vector.multi_reduction <add>, %85, %cst_46 [1] : vector<2x32xf32> to vector<2xf32>
    %87 = vector.shape_cast %86 : vector<2xf32> to vector<2x1xf32>
    %cst_47 = arith.constant 3.200000e+01 : f32
    %88 = vector.broadcast %cst_47 : f32 to vector<2x1xf32>
    %89 = arith.divf %87, %88 : vector<2x1xf32>
    %90 = vector.broadcast %82 : vector<2x1xf32> to vector<2x32xf32>
    %91 = arith.subf %78, %90 : vector<2x32xf32>
    %cst_48 = arith.constant 9.99999997E-7 : f32
    %92 = vector.broadcast %cst_48 : f32 to vector<2x1xf32>
    %93 = arith.addf %89, %92 : vector<2x1xf32>
    %94 = math.rsqrt %93 : vector<2x1xf32>
    %95 = vector.broadcast %94 : vector<2x1xf32> to vector<2x32xf32>
    %96 = arith.mulf %91, %95 : vector<2x32xf32>
    %cst_49 = arith.constant 1.000000e+00 : f32
    %97 = vector.broadcast %cst_49 : f32 to vector<2x32xf32>
    %98 = arith.addf %97, %37 : vector<2x32xf32>
    %99 = arith.mulf %96, %98 : vector<2x32xf32>
    %100 = arith.addf %99, %36 : vector<2x32xf32>
    %101 = arith.truncf %100 : vector<2x32xf32> to vector<2x32xbf16>
    %c0_50 = arith.constant 0 : index
    %c0_51 = arith.constant 0 : index
    %c0_52 = arith.constant 0 : index
    %102 = vector.load %arg14[%c0_50, %c0_51, %c0_52] : memref<2x32x64xbf16, #tpu.memory_space<vmem>>, vector<1x32x64xbf16>
    %103 = vector.shape_cast %102 : vector<1x32x64xbf16> to vector<32x64xbf16>
    %cst_53 = arith.constant dense<0.000000e+00> : vector<2x64xf32>
    %104 = tpu.matmul %101, %103, %cst_53 {dimension_numbers = #tpu.dot_dimension_numbers<[1], [0], [0], [1], [0, 0, 1, 1], [], []>} : vector<2x32xbf16>, vector<32x64xbf16>, vector<2x64xf32> -> vector<2x64xf32>
    %c0_54 = arith.constant 0 : index
    %c0_55 = arith.constant 0 : index
    %c0_56 = arith.constant 0 : index
    %105 = vector.load %arg15[%c0_54, %c0_55, %c0_56] : memref<2x1x64xf32, #tpu.memory_space<vmem>>, vector<1x1x64xf32>
    %106 = vector.shape_cast %105 : vector<1x1x64xf32> to vector<1x64xf32>
    %107 = vector.broadcast %106 : vector<1x64xf32> to vector<2x64xf32>
    %108 = arith.addf %104, %107 : vector<2x64xf32>
    %109 = arith.mulf %108, %108 : vector<2x64xf32>
    %110 = arith.mulf %108, %109 : vector<2x64xf32>
    %cst_57 = arith.constant 4.471500e-02 : f32
    %111 = vector.broadcast %cst_57 : f32 to vector<2x64xf32>
    %112 = arith.mulf %111, %110 : vector<2x64xf32>
    %113 = arith.addf %108, %112 : vector<2x64xf32>
    %cst_58 = arith.constant 0.797884583 : f32
    %114 = vector.broadcast %cst_58 : f32 to vector<2x64xf32>
    %115 = arith.mulf %114, %113 : vector<2x64xf32>
    %116 = math.tanh %115 : vector<2x64xf32>
    %cst_59 = arith.constant 1.000000e+00 : f32
    %117 = vector.broadcast %cst_59 : f32 to vector<2x64xf32>
    %118 = arith.addf %117, %116 : vector<2x64xf32>
    %cst_60 = arith.constant 5.000000e-01 : f32
    %119 = vector.broadcast %cst_60 : f32 to vector<2x64xf32>
    %120 = arith.mulf %119, %118 : vector<2x64xf32>
    %121 = arith.mulf %108, %120 : vector<2x64xf32>
    %122 = arith.truncf %121 : vector<2x64xf32> to vector<2x64xbf16>
    %c0_61 = arith.constant 0 : index
    %c0_62 = arith.constant 0 : index
    %c0_63 = arith.constant 0 : index
    %123 = vector.load %arg16[%c0_61, %c0_62, %c0_63] : memref<2x64x32xbf16, #tpu.memory_space<vmem>>, vector<1x64x32xbf16>
    %124 = vector.shape_cast %123 : vector<1x64x32xbf16> to vector<64x32xbf16>
    %cst_64 = arith.constant dense<0.000000e+00> : vector<2x32xf32>
    %125 = tpu.matmul %122, %124, %cst_64 {dimension_numbers = #tpu.dot_dimension_numbers<[1], [0], [0], [1], [0, 0, 1, 1], [], []>} : vector<2x64xbf16>, vector<64x32xbf16>, vector<2x32xf32> -> vector<2x32xf32>
    %c0_65 = arith.constant 0 : index
    %c0_66 = arith.constant 0 : index
    %c0_67 = arith.constant 0 : index
    %126 = vector.load %arg17[%c0_65, %c0_66, %c0_67] : memref<2x1x32xf32, #tpu.memory_space<vmem>>, vector<1x1x32xf32>
    %127 = vector.shape_cast %126 : vector<1x1x32xf32> to vector<1x32xf32>
    %128 = vector.broadcast %127 : vector<1x32xf32> to vector<2x32xf32>
    %129 = arith.addf %125, %128 : vector<2x32xf32>
    %130 = arith.mulf %38, %129 : vector<2x32xf32>
    %131 = arith.addf %78, %130 : vector<2x32xf32>
    %132 = vector.extract_strided_slice %32 {offsets = [0, 192], sizes = [2, 32], strides = [1, 1]} : vector<2x384xf32> to vector<2x32xf32>
    %133 = vector.extract_strided_slice %32 {offsets = [0, 224], sizes = [2, 32], strides = [1, 1]} : vector<2x384xf32> to vector<2x32xf32>
    %134 = vector.extract_strided_slice %32 {offsets = [0, 256], sizes = [2, 32], strides = [1, 1]} : vector<2x384xf32> to vector<2x32xf32>
    %135 = vector.extract_strided_slice %32 {offsets = [0, 288], sizes = [2, 32], strides = [1, 1]} : vector<2x384xf32> to vector<2x32xf32>
    %136 = vector.extract_strided_slice %32 {offsets = [0, 320], sizes = [2, 32], strides = [1, 1]} : vector<2x384xf32> to vector<2x32xf32>
    %137 = vector.extract_strided_slice %32 {offsets = [0, 352], sizes = [2, 32], strides = [1, 1]} : vector<2x384xf32> to vector<2x32xf32>
    %cst_68 = arith.constant dense<0.000000e+00> : vector<2xf32>
    %138 = vector.multi_reduction <add>, %131, %cst_68 [1] : vector<2x32xf32> to vector<2xf32>
    %139 = vector.shape_cast %138 : vector<2xf32> to vector<2x1xf32>
    %cst_69 = arith.constant 3.200000e+01 : f32
    %140 = vector.broadcast %cst_69 : f32 to vector<2x1xf32>
    %141 = arith.divf %139, %140 : vector<2x1xf32>
    %142 = vector.broadcast %141 : vector<2x1xf32> to vector<2x32xf32>
    %143 = arith.subf %131, %142 : vector<2x32xf32>
    %144 = arith.mulf %143, %143 : vector<2x32xf32>
    %cst_70 = arith.constant dense<0.000000e+00> : vector<2xf32>
    %145 = vector.multi_reduction <add>, %144, %cst_70 [1] : vector<2x32xf32> to vector<2xf32>
    %146 = vector.shape_cast %145 : vector<2xf32> to vector<2x1xf32>
    %cst_71 = arith.constant 3.200000e+01 : f32
    %147 = vector.broadcast %cst_71 : f32 to vector<2x1xf32>
    %148 = arith.divf %146, %147 : vector<2x1xf32>
    %149 = vector.broadcast %141 : vector<2x1xf32> to vector<2x32xf32>
    %150 = arith.subf %131, %149 : vector<2x32xf32>
    %cst_72 = arith.constant 9.99999997E-7 : f32
    %151 = vector.broadcast %cst_72 : f32 to vector<2x1xf32>
    %152 = arith.addf %148, %151 : vector<2x1xf32>
    %153 = math.rsqrt %152 : vector<2x1xf32>
    %154 = vector.broadcast %153 : vector<2x1xf32> to vector<2x32xf32>
    %155 = arith.mulf %150, %154 : vector<2x32xf32>
    %cst_73 = arith.constant 1.000000e+00 : f32
    %156 = vector.broadcast %cst_73 : f32 to vector<2x32xf32>
    %157 = arith.addf %156, %133 : vector<2x32xf32>
    %158 = arith.mulf %155, %157 : vector<2x32xf32>
    %159 = arith.addf %158, %132 : vector<2x32xf32>
    %160 = arith.truncf %159 : vector<2x32xf32> to vector<2x32xbf16>
    %c1 = arith.constant 1 : index
    %c0_74 = arith.constant 0 : index
    %c0_75 = arith.constant 0 : index
    %161 = vector.load %arg10[%c1, %c0_74, %c0_75] : memref<2x32x32xbf16, #tpu.memory_space<vmem>>, vector<1x32x32xbf16>
    %162 = vector.shape_cast %161 : vector<1x32x32xbf16> to vector<32x32xbf16>
    %cst_76 = arith.constant dense<0.000000e+00> : vector<2x32xf32>
    %163 = tpu.matmul %160, %162, %cst_76 {dimension_numbers = #tpu.dot_dimension_numbers<[1], [0], [0], [1], [0, 0, 1, 1], [], []>} : vector<2x32xbf16>, vector<32x32xbf16>, vector<2x32xf32> -> vector<2x32xf32>
    %c1_77 = arith.constant 1 : index
    %c0_78 = arith.constant 0 : index
    %c0_79 = arith.constant 0 : index
    %164 = vector.load %arg11[%c1_77, %c0_78, %c0_79] : memref<2x1x32xf32, #tpu.memory_space<vmem>>, vector<1x1x32xf32>
    %165 = vector.shape_cast %164 : vector<1x1x32xf32> to vector<1x32xf32>
    %166 = vector.broadcast %165 : vector<1x32xf32> to vector<2x32xf32>
    %167 = arith.addf %163, %166 : vector<2x32xf32>
    %168 = arith.truncf %167 : vector<2x32xf32> to vector<2x32xbf16>
    %c1_80 = arith.constant 1 : index
    %c0_81 = arith.constant 0 : index
    %c0_82 = arith.constant 0 : index
    %169 = vector.load %arg12[%c1_80, %c0_81, %c0_82] : memref<2x32x32xbf16, #tpu.memory_space<vmem>>, vector<1x32x32xbf16>
    %170 = vector.shape_cast %169 : vector<1x32x32xbf16> to vector<32x32xbf16>
    %cst_83 = arith.constant dense<0.000000e+00> : vector<2x32xf32>
    %171 = tpu.matmul %168, %170, %cst_83 {dimension_numbers = #tpu.dot_dimension_numbers<[1], [0], [0], [1], [0, 0, 1, 1], [], []>} : vector<2x32xbf16>, vector<32x32xbf16>, vector<2x32xf32> -> vector<2x32xf32>
    %c1_84 = arith.constant 1 : index
    %c0_85 = arith.constant 0 : index
    %c0_86 = arith.constant 0 : index
    %172 = vector.load %arg13[%c1_84, %c0_85, %c0_86] : memref<2x1x32xf32, #tpu.memory_space<vmem>>, vector<1x1x32xf32>
    %173 = vector.shape_cast %172 : vector<1x1x32xf32> to vector<1x32xf32>
    %174 = vector.broadcast %173 : vector<1x32xf32> to vector<2x32xf32>
    %175 = arith.addf %171, %174 : vector<2x32xf32>
    %176 = arith.mulf %134, %175 : vector<2x32xf32>
    %177 = arith.addf %131, %176 : vector<2x32xf32>
    %cst_87 = arith.constant dense<0.000000e+00> : vector<2xf32>
    %178 = vector.multi_reduction <add>, %177, %cst_87 [1] : vector<2x32xf32> to vector<2xf32>
    %179 = vector.shape_cast %178 : vector<2xf32> to vector<2x1xf32>
    %cst_88 = arith.constant 3.200000e+01 : f32
    %180 = vector.broadcast %cst_88 : f32 to vector<2x1xf32>
    %181 = arith.divf %179, %180 : vector<2x1xf32>
    %182 = vector.broadcast %181 : vector<2x1xf32> to vector<2x32xf32>
    %183 = arith.subf %177, %182 : vector<2x32xf32>
    %184 = arith.mulf %183, %183 : vector<2x32xf32>
    %cst_89 = arith.constant dense<0.000000e+00> : vector<2xf32>
    %185 = vector.multi_reduction <add>, %184, %cst_89 [1] : vector<2x32xf32> to vector<2xf32>
    %186 = vector.shape_cast %185 : vector<2xf32> to vector<2x1xf32>
    %cst_90 = arith.constant 3.200000e+01 : f32
    %187 = vector.broadcast %cst_90 : f32 to vector<2x1xf32>
    %188 = arith.divf %186, %187 : vector<2x1xf32>
    %189 = vector.broadcast %181 : vector<2x1xf32> to vector<2x32xf32>
    %190 = arith.subf %177, %189 : vector<2x32xf32>
    %cst_91 = arith.constant 9.99999997E-7 : f32
    %191 = vector.broadcast %cst_91 : f32 to vector<2x1xf32>
    %192 = arith.addf %188, %191 : vector<2x1xf32>
    %193 = math.rsqrt %192 : vector<2x1xf32>
    %194 = vector.broadcast %193 : vector<2x1xf32> to vector<2x32xf32>
    %195 = arith.mulf %190, %194 : vector<2x32xf32>
    %cst_92 = arith.constant 1.000000e+00 : f32
    %196 = vector.broadcast %cst_92 : f32 to vector<2x32xf32>
    %197 = arith.addf %196, %136 : vector<2x32xf32>
    %198 = arith.mulf %195, %197 : vector<2x32xf32>
    %199 = arith.addf %198, %135 : vector<2x32xf32>
    %200 = arith.truncf %199 : vector<2x32xf32> to vector<2x32xbf16>
    %c1_93 = arith.constant 1 : index
    %c0_94 = arith.constant 0 : index
    %c0_95 = arith.constant 0 : index
    %201 = vector.load %arg14[%c1_93, %c0_94, %c0_95] : memref<2x32x64xbf16, #tpu.memory_space<vmem>>, vector<1x32x64xbf16>
    %202 = vector.shape_cast %201 : vector<1x32x64xbf16> to vector<32x64xbf16>
    %cst_96 = arith.constant dense<0.000000e+00> : vector<2x64xf32>
    %203 = tpu.matmul %200, %202, %cst_96 {dimension_numbers = #tpu.dot_dimension_numbers<[1], [0], [0], [1], [0, 0, 1, 1], [], []>} : vector<2x32xbf16>, vector<32x64xbf16>, vector<2x64xf32> -> vector<2x64xf32>
    %c1_97 = arith.constant 1 : index
    %c0_98 = arith.constant 0 : index
    %c0_99 = arith.constant 0 : index
    %204 = vector.load %arg15[%c1_97, %c0_98, %c0_99] : memref<2x1x64xf32, #tpu.memory_space<vmem>>, vector<1x1x64xf32>
    %205 = vector.shape_cast %204 : vector<1x1x64xf32> to vector<1x64xf32>
    %206 = vector.broadcast %205 : vector<1x64xf32> to vector<2x64xf32>
    %207 = arith.addf %203, %206 : vector<2x64xf32>
    %208 = arith.mulf %207, %207 : vector<2x64xf32>
    %209 = arith.mulf %207, %208 : vector<2x64xf32>
    %cst_100 = arith.constant 4.471500e-02 : f32
    %210 = vector.broadcast %cst_100 : f32 to vector<2x64xf32>
    %211 = arith.mulf %210, %209 : vector<2x64xf32>
    %212 = arith.addf %207, %211 : vector<2x64xf32>
    %cst_101 = arith.constant 0.797884583 : f32
    %213 = vector.broadcast %cst_101 : f32 to vector<2x64xf32>
    %214 = arith.mulf %213, %212 : vector<2x64xf32>
    %215 = math.tanh %214 : vector<2x64xf32>
    %cst_102 = arith.constant 1.000000e+00 : f32
    %216 = vector.broadcast %cst_102 : f32 to vector<2x64xf32>
    %217 = arith.addf %216, %215 : vector<2x64xf32>
    %cst_103 = arith.constant 5.000000e-01 : f32
    %218 = vector.broadcast %cst_103 : f32 to vector<2x64xf32>
    %219 = arith.mulf %218, %217 : vector<2x64xf32>
    %220 = arith.mulf %207, %219 : vector<2x64xf32>
    %221 = arith.truncf %220 : vector<2x64xf32> to vector<2x64xbf16>
    %c1_104 = arith.constant 1 : index
    %c0_105 = arith.constant 0 : index
    %c0_106 = arith.constant 0 : index
    %222 = vector.load %arg16[%c1_104, %c0_105, %c0_106] : memref<2x64x32xbf16, #tpu.memory_space<vmem>>, vector<1x64x32xbf16>
    %223 = vector.shape_cast %222 : vector<1x64x32xbf16> to vector<64x32xbf16>
    %cst_107 = arith.constant dense<0.000000e+00> : vector<2x32xf32>
    %224 = tpu.matmul %221, %223, %cst_107 {dimension_numbers = #tpu.dot_dimension_numbers<[1], [0], [0], [1], [0, 0, 1, 1], [], []>} : vector<2x64xbf16>, vector<64x32xbf16>, vector<2x32xf32> -> vector<2x32xf32>
    %c1_108 = arith.constant 1 : index
    %c0_109 = arith.constant 0 : index
    %c0_110 = arith.constant 0 : index
    %225 = vector.load %arg17[%c1_108, %c0_109, %c0_110] : memref<2x1x32xf32, #tpu.memory_space<vmem>>, vector<1x1x32xf32>
    %226 = vector.shape_cast %225 : vector<1x1x32xf32> to vector<1x32xf32>
    %227 = vector.broadcast %226 : vector<1x32xf32> to vector<2x32xf32>
    %228 = arith.addf %224, %227 : vector<2x32xf32>
    %229 = arith.mulf %137, %228 : vector<2x32xf32>
    %230 = arith.addf %177, %229 : vector<2x32xf32>
    %c0_111 = arith.constant 0 : index
    %c0_112 = arith.constant 0 : index
    %231 = vector.load %arg18[%c0_111, %c0_112] : memref<1x32xf32, #tpu.memory_space<vmem>>, vector<1x32xf32>
    %c0_113 = arith.constant 0 : index
    %c0_114 = arith.constant 0 : index
    %232 = vector.load %arg19[%c0_113, %c0_114] : memref<1x32xf32, #tpu.memory_space<vmem>>, vector<1x32xf32>
    %cst_115 = arith.constant dense<0.000000e+00> : vector<2xf32>
    %233 = vector.multi_reduction <add>, %230, %cst_115 [1] : vector<2x32xf32> to vector<2xf32>
    %234 = vector.shape_cast %233 : vector<2xf32> to vector<2x1xf32>
    %cst_116 = arith.constant 3.200000e+01 : f32
    %235 = vector.broadcast %cst_116 : f32 to vector<2x1xf32>
    %236 = arith.divf %234, %235 : vector<2x1xf32>
    %237 = vector.broadcast %236 : vector<2x1xf32> to vector<2x32xf32>
    %238 = arith.subf %230, %237 : vector<2x32xf32>
    %239 = arith.mulf %238, %238 : vector<2x32xf32>
    %cst_117 = arith.constant dense<0.000000e+00> : vector<2xf32>
    %240 = vector.multi_reduction <add>, %239, %cst_117 [1] : vector<2x32xf32> to vector<2xf32>
    %241 = vector.shape_cast %240 : vector<2xf32> to vector<2x1xf32>
    %cst_118 = arith.constant 3.200000e+01 : f32
    %242 = vector.broadcast %cst_118 : f32 to vector<2x1xf32>
    %243 = arith.divf %241, %242 : vector<2x1xf32>
    %244 = vector.broadcast %236 : vector<2x1xf32> to vector<2x32xf32>
    %245 = arith.subf %230, %244 : vector<2x32xf32>
    %cst_119 = arith.constant 9.99999974E-6 : f32
    %246 = vector.broadcast %cst_119 : f32 to vector<2x1xf32>
    %247 = arith.addf %243, %246 : vector<2x1xf32>
    %248 = math.rsqrt %247 : vector<2x1xf32>
    %249 = vector.broadcast %248 : vector<2x1xf32> to vector<2x32xf32>
    %250 = arith.mulf %245, %249 : vector<2x32xf32>
    %251 = vector.broadcast %231 : vector<1x32xf32> to vector<2x32xf32>
    %252 = arith.mulf %250, %251 : vector<2x32xf32>
    %253 = vector.broadcast %232 : vector<1x32xf32> to vector<2x32xf32>
    %254 = arith.addf %252, %253 : vector<2x32xf32>
    %255 = arith.truncf %254 : vector<2x32xf32> to vector<2x32xbf16>
    %c0_120 = arith.constant 0 : index
    %c0_121 = arith.constant 0 : index
    %256 = vector.load %arg20[%c0_120, %c0_121] : memref<32x1xbf16, #tpu.memory_space<vmem>>, vector<32x1xbf16>
    %cst_122 = arith.constant dense<0.000000e+00> : vector<2x1xf32>
    %257 = tpu.matmul %255, %256, %cst_122 {dimension_numbers = #tpu.dot_dimension_numbers<[1], [0], [0], [1], [0, 0, 1, 1], [], []>} : vector<2x32xbf16>, vector<32x1xbf16>, vector<2x1xf32> -> vector<2x1xf32>
    %c0_123 = arith.constant 0 : index
    %c0_124 = arith.constant 0 : index
    %258 = vector.load %arg21[%c0_123, %c0_124] : memref<1x1xf32, #tpu.memory_space<vmem>>, vector<1x1xf32>
    %259 = vector.broadcast %258 : vector<1x1xf32> to vector<2x1xf32>
    %260 = arith.addf %257, %259 : vector<2x1xf32>
    %c0_125 = arith.constant 0 : index
    %c0_126 = arith.constant 0 : index
    %261 = vector.load %arg22[%c0_125, %c0_126] : memref<2x1xf32, #tpu.memory_space<vmem>>, vector<2x1xf32>
    tpu.vector_store %arg22[%c0_125, %c0_126], %260 {strides = array<i32>} : memref<2x1xf32, #tpu.memory_space<vmem>>, vector<2x1xf32>,
    return
  }
}

</mosaic_0001>

<bundles_post_ra>
// kernel: tpu_custom_call.1
= control target key start
LH: loop header
LB: loop body
LE: loop exit
PB: predicated region body
PF: predicated region fallthrough
CT: control target
= control target key end

     0   :  { %s6593_s0 = inlined_call_operand.vmem [shape: bf16[2,4096], index: 0, kind: input, shape index: {}]   ;;  %s6594_s1 = inlined_call_operand.hbm [shape: f32[2,7], index: 1, kind: input, shape index: {}]   ;;  %s6595_s2 = inlined_call_operand.hbm [shape: bf16[4096,128], index: 2, kind: input, shape index: {}]   ;;  %s6596_s3 = inlined_call_operand.vmem [shape: f32[1,128], index: 3, kind: input, shape index: {}]   ;;  %s6597_s4 = inlined_call_operand.hbm [shape: bf16[7,128], index: 4, kind: input, shape index: {}]   ;;  %s6598_s5 = inlined_call_operand.hbm [shape: f32[1,128], index: 5, kind: input, shape index: {}]   ;;  %s6599_s6 = inlined_call_operand.vmem [shape: bf16[128,32], index: 6, kind: input, shape index: {}]   ;;  %s6600_s7 = inlined_call_operand.hbm [shape: f32[1,32], index: 7, kind: input, shape index: {}]   ;;  %s6601_s8 = inlined_call_operand.vmem [shape: bf16[128,384], index: 8, kind: input, shape index: {}]   ;;  %s6602_s9 = inlined_call_operand.hbm [shape: f32[1,384], index: 9, kind: input, shape index: {}]   ;;  %s6603_s10 = inlined_call_operand.hbm [shape: bf16[2,32,32], index: 10, kind: input, shape index: {}]   ;;  %s6604_s11 = inlined_call_operand.hbm [shape: f32[2,1,32], index: 11, kind: input, shape index: {}]   ;;  %s6605_s12 = inlined_call_operand.hbm [shape: bf16[2,32,32], index: 12, kind: input, shape index: {}]   ;;  %s6606_s13 = inlined_call_operand.hbm [shape: f32[2,1,32], index: 13, kind: input, shape index: {}]   ;;  %s6607_s14 = inlined_call_operand.hbm [shape: bf16[2,32,64], index: 14, kind: input, shape index: {}]   ;;  %s6608_s15 = inlined_call_operand.hbm [shape: f32[2,1,64], index: 15, kind: input, shape index: {}]   ;;  %s6609_s16 = inlined_call_operand.vmem [shape: bf16[2,64,32], index: 16, kind: input, shape index: {}]   ;;  %s6610_s17 = inlined_call_operand.vmem [shape: f32[2,1,32], index: 17, kind: input, shape index: {}]   ;;  %s6611_s18 = inlined_call_operand.vmem [shape: f32[1,32], index: 18, kind: input, shape index: {}]   ;;  %s6612_s19 = inlined_call_operand.vmem [shape: f32[1,32], index: 19, kind: input, shape index: {}]   ;;  %s6613_s20 = inlined_call_operand.vmem [shape: bf16[32,1], index: 20, kind: input, shape index: {}]   ;;  %s6614_s21 = inlined_call_operand.<no memory space> [shape: f32[1,1], index: 21, kind: input, shape index: {}]   ;;  %s6615_s22 = inlined_call_operand.vmem [shape: f32[2,1], index: 22, kind: output, shape index: {}]  }
   0x1   :  { %6622 = sst [smem:[#allocation29_spill]] %s6593_s0  ;;  %v27_v0 = vstv %s6614_s21 }
   0x2   :  { %6623 = sst [smem:[#allocation30_spill]] %s6594_s1  ;;  %28 = vst [vmem:[#allocation2] sm:$0x1] %v27_v0 }
   0x3   :  { %6624 = sst [smem:[#allocation31_spill]] %s6595_s2 }
   0x4   :  { %6625 = sst [smem:[#allocation32_spill]] %s6596_s3 }
   0x5   :  { %6626 = sst [smem:[#allocation33_spill]] %s6597_s4 }
   0x6   :  { %6627 = sst [smem:[#allocation34_spill]] %s6598_s5 }
   0x7   :  { %6628 = sst [smem:[#allocation35_spill]] %s6599_s6 }
   0x8   :  { %6629 = sst [smem:[#allocation36_spill]] %s6612_s19 }
   0x9   :  { %6630 = sst [smem:[#allocation37_spill]] %s6615_s22 }
   0xa   :  { %29 = vsyncpa [#allocation4], 0 }
   0xb   :  { %30 = vsyncpa [#allocation6], 0 }
   0xc   :  { %31 = vsyncpa [#allocation9], 0 }
   0xd   :  { %32 = vsyncpa [#allocation12], 0 }
   0xe   :  { %33 = vsyncpa [#allocation15], 0 }
   0xf   :  { %34 = vsyncpa [#allocation18], 0 }
  0x10   :  { %35 = vsyncpa [#allocation21], 0  ;;  %s5938_s29 = smov [#allocation5]   ;;  %s6631_s23 = sld [smem:[#allocation31_spill]] }
  0x11   :  { %s53_s30 = sshll.u32 %s5938_s29, 4  ;;  %s54_s30 = int_to_ptr.vmem [resolvable:$true] %s53_s30 }
  0x16   :  { %s5660_s1 = scalar_lea.hbm %s6631_s23, 32768 }
  0x17   :  { %p5661_p0 = scmp.ne.s32.totalorder %s6631_s23, %s5660_s1  ;;  %p5664_p1 = scmp.lt.u32.totalorder %s5660_s1, %s6631_s23 }
  0x19   :  { %p5666_p2 = pnand %p5664_p1, %p5661_p0 }
  0x1b   :  { %5669 = shalt.err (!%p5666_p2)
}
  0x1c   :  { %s5670_s25 = scalar_lea.vmem %s54_s30, 32768  ;;  %p5675_p4 = scmp.lt.s32.totalorder %s54_s30, %s54_s30 }
  0x1d   :  { %p5671_p3 = scmp.ne.s32.totalorder %s54_s30, %s5670_s25  ;;  %p5676_p5 = scmp.lt.s32.totalorder %s5670_s25, %s5670_s25 }
  0x1f   :  { %p5677_p6 = por %p5676_p5, %p5675_p4 }
  0x21   :  { %p5678_p7 = pnand %p5677_p6, %p5671_p3 }
  0x23   :  { %5681 = shalt.err (!%p5678_p7)
}
  0x24   :  { %s5939_s26 = smov 64   ;;  %s5940_s2 = smov 4  }
  0x25   :  { %59 = dma.hbm_to_vmem [thread:$0]  %s6631_s23, 32768, %s54_s30, [#allocation6], %s5939_s26, %s5939_s26, %s5940_s2  }
  0x26   :  { %s5941_s28 = smov [#allocation8]   ;;  %s5942_s4 = smov [#allocation11]  }
  0x27   :  { %s78_s29 = sshll.u32 %s5941_s28, 4  ;;  %s102_s0 = sshll.u32 %s5942_s4, 4  ;;  %s79_s29 = int_to_ptr.vmem [resolvable:$true] %s78_s29  ;;  %s103_s0 = int_to_ptr.vmem [resolvable:$true] %s102_s0 }
  0x28   :  { %s6632_s24 = sld [smem:[#allocation34_spill]] }
  0x2e   :  { %s5682_s21 = scalar_lea.hbm %s6632_s24, 16 }
  0x2f   :  { %p5683_p8 = scmp.ne.s32.totalorder %s6632_s24, %s5682_s21  ;;  %p5686_p9 = scmp.lt.u32.totalorder %s5682_s21, %s6632_s24 }
  0x31   :  { %p5688_p10 = pnand %p5686_p9, %p5683_p8 }
  0x33   :  { %5691 = shalt.err (!%p5688_p10)
}
  0x34   :  { %s5692_s30 = scalar_lea.vmem %s79_s29, 16  ;;  %s5696_s23 = scalar_lea.vmem %s79_s29, 32 }
  0x35   :  { %p5693_p11 = scmp.ne.s32.totalorder %s79_s29, %s5692_s30  ;;  %p5697_p12 = scmp.lt.s32.totalorder %s79_s29, %s79_s29 }
  0x36   :  { %p5698_p13 = scmp.lt.s32.totalorder %s5696_s23, %s5692_s30 }
  0x38   :  { %p5699_p0 = por %p5698_p13, %p5697_p12 }
  0x3a   :  { %p5700_p1 = pnand %p5699_p0, %p5693_p11 }
  0x3c   :  { %5703 = shalt.err (!%p5700_p1)
}
  0x3d   :  { %81 = dma.hbm_to_vmem [thread:$0]  %s6632_s24, 16, %s79_s29, [#allocation9]  }
  0x3e   :  { %s5704_s19 = scalar_lea.hbm %s6602_s9, 48 }
  0x3f   :  { %p5705_p2 = scmp.ne.s32.totalorder %s6602_s9, %s5704_s19  ;;  %p5708_p3 = scmp.lt.u32.totalorder %s5704_s19, %s6602_s9 }
  0x41   :  { %p5710_p4 = pnand %p5708_p3, %p5705_p2 }
  0x43   :  { %5713 = shalt.err (!%p5710_p4)
}
  0x44   :  { %s5714_s6 = scalar_lea.vmem %s103_s0, 48  ;;  %s5718_s25 = scalar_lea.vmem %s103_s0, 64 }
  0x45   :  { %p5715_p5 = scmp.ne.s32.totalorder %s103_s0, %s5714_s6  ;;  %p5719_p6 = scmp.lt.s32.totalorder %s103_s0, %s103_s0 }
  0x46   :  { %p5720_p7 = scmp.lt.s32.totalorder %s5718_s25, %s5714_s6 }
  0x48   :  { %p5721_p8 = por %p5720_p7, %p5719_p6 }
  0x4a   :  { %p5722_p9 = pnand %p5721_p8, %p5715_p5 }
  0x4c   :  { %5725 = shalt.err (!%p5722_p9)
}
  0x4d   :  { %105 = dma.hbm_to_vmem [thread:$0]  %s6602_s9, 48, %s103_s0, [#allocation12]  }
  0x4e   :  { %s5943_s30 = smov [#allocation14]   ;;  %s5726_s28 = scalar_lea.hbm %s6604_s11, 32 }
  0x4f   :  { %s123_s23 = sshll.u32 %s5943_s30, 4  ;;  %p5727_p10 = scmp.ne.s32.totalorder %s6604_s11, %s5726_s28  ;;  %s124_s23 = int_to_ptr.vmem [resolvable:$true] %s123_s23 }
  0x50   :  { %p5730_p11 = scmp.lt.u32.totalorder %s5726_s28, %s6604_s11 }
  0x52   :  { %p5732_p12 = pnand %p5730_p11, %p5727_p10 }
  0x54   :  { %5735 = shalt.err (!%p5732_p12)
}
  0x55   :  { %s5736_s5 = scalar_lea.vmem %s124_s23, 32  ;;  %p5741_p0 = scmp.lt.s32.totalorder %s124_s23, %s124_s23 }
  0x56   :  { %p5737_p13 = scmp.ne.s32.totalorder %s124_s23, %s5736_s5  ;;  %p5742_p1 = scmp.lt.s32.totalorder %s5736_s5, %s5736_s5 }
  0x58   :  { %p5743_p2 = por %p5742_p1, %p5741_p0 }
  0x5a   :  { %p5744_p3 = pnand %p5743_p2, %p5737_p13 }
  0x5c   :  { %5747 = shalt.err (!%p5744_p3)
}
  0x5d   :  { %s5944_s9 = smov 16   ;;  %s5945_s0 = smov 1  }
  0x5e   :  { %129 = dma.hbm_to_vmem [thread:$0]  %s6604_s11, 32, %s124_s23, [#allocation15], %s5944_s9, %s5944_s9, %s5945_s0  }
  0x5f   :  { %s5946_s25 = smov [#allocation17]   ;;  %s5947_s24 = smov [#allocation3]  }
  0x60   :  { %s147_s29 = sshll.u32 %s5946_s25, 4  ;;  %s44_s30 = sshll.u32 %s5947_s24, 4  ;;  %s148_s29 = int_to_ptr.vmem [resolvable:$true] %s147_s29  ;;  %s45_s30 = int_to_ptr.vmem [resolvable:$true] %s44_s30 }
  0x61   :  { %s5748_s28 = scalar_lea.hbm %s6606_s13, 32 }
  0x62   :  { %p5749_p4 = scmp.ne.s32.totalorder %s6606_s13, %s5748_s28  ;;  %p5752_p5 = scmp.lt.u32.totalorder %s5748_s28, %s6606_s13 }
  0x64   :  { %p5754_p6 = pnand %p5752_p5, %p5749_p4 }
  0x66   :  { %5757 = shalt.err (!%p5754_p6)
}
  0x67   :  { %s5758_s11 = scalar_lea.vmem %s148_s29, 32  ;;  %p5763_p8 = scmp.lt.s32.totalorder %s148_s29, %s148_s29 }
  0x68   :  { %p5759_p7 = scmp.ne.s32.totalorder %s148_s29, %s5758_s11  ;;  %p5764_p9 = scmp.lt.s32.totalorder %s5758_s11, %s5758_s11 }
  0x6a   :  { %p5765_p10 = por %p5764_p9, %p5763_p8 }
  0x6c   :  { %p5766_p11 = pnand %p5765_p10, %p5759_p7 }
  0x6e   :  { %5769 = shalt.err (!%p5766_p11)
}
  0x6f   :  { %153 = dma.hbm_to_vmem [thread:$0]  %s6606_s13, 32, %s148_s29, [#allocation18], %s5944_s9, %s5944_s9, %s5945_s0  }
  0x70   :  { %s6633_s25 = sld [smem:[#allocation30_spill]] }
  0x76   :  { %s5770_s24 = scalar_lea.hbm %s6633_s25, 32 }
  0x77   :  { %p5771_p12 = scmp.ne.s32.totalorder %s6633_s25, %s5770_s24  ;;  %p5774_p13 = scmp.lt.u32.totalorder %s5770_s24, %s6633_s25 }
  0x79   :  { %p5776_p0 = pnand %p5774_p13, %p5771_p12 }
  0x7b   :  { %5779 = shalt.err (!%p5776_p0)
}
  0x7c   :  { %s5780_s19 = scalar_lea.vmem %s45_s30, 32  ;;  %p5785_p2 = scmp.lt.s32.totalorder %s45_s30, %s45_s30 }
  0x7d   :  { %p5781_p1 = scmp.ne.s32.totalorder %s45_s30, %s5780_s19  ;;  %p5786_p3 = scmp.lt.s32.totalorder %s5780_s19, %s5780_s19 }
  0x7f   :  { %p5787_p4 = por %p5786_p3, %p5785_p2 }
  0x81   :  { %p5788_p5 = pnand %p5787_p4, %p5781_p1 }
  0x83   :  { %5791 = shalt.err (!%p5788_p5)
}
  0x84   :  { %47 = dma.hbm_to_vmem [thread:$0]  %s6633_s25, 32, %s45_s30, [#allocation4]  }
  0x85   :  { %s5948_s22 = smov [#allocation7]   ;;  %s5949_s11 = smov [#allocation10]  }
  0x86   :  { %s68_s1 = sshll.u32 %s5948_s22, 4  ;;  %s90_s23 = sshll.u32 %s5949_s11, 4  ;;  %s69_s1 = int_to_ptr.vmem [resolvable:$true] %s68_s1  ;;  %s91_s23 = int_to_ptr.vmem [resolvable:$true] %s90_s23 }
  0x87   :  { %s6634_s6 = sld [smem:[#allocation33_spill]] }
  0x8d   :  { %s5792_s24 = scalar_lea.hbm %s6634_s6, 64 }
  0x8e   :  { %p5793_p6 = scmp.ne.s32.totalorder %s6634_s6, %s5792_s24  ;;  %p5796_p7 = scmp.lt.u32.totalorder %s5792_s24, %s6634_s6 }
  0x90   :  { %p5798_p8 = pnand %p5796_p7, %p5793_p6 }
  0x92   :  { %5801 = shalt.err (!%p5798_p8)
}
  0x93   :  { %s5802_s30 = scalar_lea.vmem %s69_s1, 64  ;;  %p5807_p10 = scmp.lt.s32.totalorder %s69_s1, %s69_s1 }
  0x94   :  { %p5803_p9 = scmp.ne.s32.totalorder %s69_s1, %s5802_s30  ;;  %p5808_p11 = scmp.lt.s32.totalorder %s5802_s30, %s5802_s30 }
  0x96   :  { %p5809_p12 = por %p5808_p11, %p5807_p10 }
  0x98   :  { %p5810_p13 = pnand %p5809_p12, %p5803_p9 }
  0x9a   :  { %5813 = shalt.err (!%p5810_p13)
}
  0x9b   :  { %71 = dma.hbm_to_vmem [thread:$0]  %s6634_s6, 64, %s69_s1, [#allocation6]  }
  0x9c   :  { %s5814_s22 = scalar_lea.hbm %s6600_s7, 16 }
  0x9d   :  { %p5815_p0 = scmp.ne.s32.totalorder %s6600_s7, %s5814_s22  ;;  %p5818_p1 = scmp.lt.u32.totalorder %s5814_s22, %s6600_s7 }
  0x9f   :  { %p5820_p2 = pnand %p5818_p1, %p5815_p0 }
  0xa1   :  { %5823 = shalt.err (!%p5820_p2)
}
  0xa2   :  { %s5824_s27 = scalar_lea.vmem %s91_s23, 16  ;;  %s5828_s3 = scalar_lea.vmem %s91_s23, 32 }
  0xa3   :  { %p5825_p3 = scmp.ne.s32.totalorder %s91_s23, %s5824_s27  ;;  %p5829_p4 = scmp.lt.s32.totalorder %s91_s23, %s91_s23 }
  0xa4   :  { %p5830_p5 = scmp.lt.s32.totalorder %s5828_s3, %s5824_s27 }
  0xa6   :  { %p5831_p6 = por %p5830_p5, %p5829_p4 }
  0xa8   :  { %p5832_p7 = pnand %p5831_p6, %p5825_p3 }
  0xaa   :  { %5835 = shalt.err (!%p5832_p7)
}
  0xab   :  { %93 = dma.hbm_to_vmem [thread:$0]  %s6600_s7, 16, %s91_s23, [#allocation9]  }
  0xac   :  { %s5950_s28 = smov [#allocation13]   ;;  %s5951_s30 = smov [#allocation16]  }
  0xad   :  { %s111_s4 = sshll.u32 %s5950_s28, 4  ;;  %s135_s25 = sshll.u32 %s5951_s30, 4  ;;  %s112_s4 = int_to_ptr.vmem [resolvable:$true] %s111_s4  ;;  %s6184_s25 = int_to_ptr.vmem [resolvable:$true] %s135_s25 }
  0xae   :  { %s5836_s29 = scalar_lea.hbm %s6603_s10, 512 }
  0xaf   :  { %p5837_p8 = scmp.ne.s32.totalorder %s6603_s10, %s5836_s29  ;;  %p5840_p9 = scmp.lt.u32.totalorder %s5836_s29, %s6603_s10 }
  0xb1   :  { %p5842_p10 = pnand %p5840_p9, %p5837_p8 }
  0xb3   :  { %5845 = shalt.err (!%p5842_p10)
}
  0xb4   :  { %s5846_s7 = scalar_lea.vmem %s112_s4, 512  ;;  %p5851_p12 = scmp.lt.s32.totalorder %s112_s4, %s112_s4 }
  0xb5   :  { %p5847_p11 = scmp.ne.s32.totalorder %s112_s4, %s5846_s7  ;;  %p5852_p13 = scmp.lt.s32.totalorder %s5846_s7, %s5846_s7 }
  0xb7   :  { %p5853_p0 = por %p5852_p13, %p5851_p12 }
  0xb9   :  { %p5854_p1 = pnand %p5853_p0, %p5847_p11 }
  0xbb   :  { %5857 = shalt.err (!%p5854_p1)
}
  0xbc   :  { %117 = dma.hbm_to_vmem [thread:$0]  %s6603_s10, 512, %s112_s4, [#allocation12], %s5939_s26, %s5939_s26, %s5940_s2  }
  0xbd   :  { %s5858_s1 = scalar_lea.hbm %s6605_s12, 512 }
  0xbe   :  { %p5859_p2 = scmp.ne.s32.totalorder %s6605_s12, %s5858_s1  ;;  %p5862_p3 = scmp.lt.u32.totalorder %s5858_s1, %s6605_s12 }
  0xc0   :  { %p5864_p4 = pnand %p5862_p3, %p5859_p2 }
  0xc2   :  { %5867 = shalt.err (!%p5864_p4)
}
  0xc3   :  { %s5868_s13 = scalar_lea.vmem %s6184_s25, 512  ;;  %p5873_p6 = scmp.lt.s32.totalorder %s6184_s25, %s6184_s25 }
  0xc4   :  { %p5869_p5 = scmp.ne.s32.totalorder %s6184_s25, %s5868_s13  ;;  %p5874_p7 = scmp.lt.s32.totalorder %s5868_s13, %s5868_s13 }
  0xc6   :  { %p5875_p8 = por %p5874_p7, %p5873_p6 }
  0xc8   :  { %p5876_p9 = pnand %p5875_p8, %p5869_p5 }
  0xca   :  { %5879 = shalt.err (!%p5876_p9)
}
  0xcb   :  { %141 = dma.hbm_to_vmem [thread:$0]  %s6605_s12, 512, %s6184_s25, [#allocation15], %s5939_s26, %s5939_s26, %s5940_s2  }
  0xcc   :  { %s5952_s29 = smov [#allocation19]   ;;  %s5953_s11 = smov [#allocation20]  }
  0xcd   :  { %s159_s22 = sshll.u32 %s5952_s29, 4  ;;  %s171_s5 = sshll.u32 %s5953_s11, 4  ;;  %s160_s22 = int_to_ptr.vmem [resolvable:$true] %s159_s22  ;;  %s6221_s5 = int_to_ptr.vmem [resolvable:$true] %s171_s5 }
  0xce   :  { %s5880_s23 = scalar_lea.hbm %s6607_s14, 512 }
  0xcf   :  { %p5881_p10 = scmp.ne.s32.totalorder %s6607_s14, %s5880_s23  ;;  %p5884_p11 = scmp.lt.u32.totalorder %s5880_s23, %s6607_s14 }
  0xd1   :  { %p5886_p12 = pnand %p5884_p11, %p5881_p10 }
  0xd3   :  { %5889 = shalt.err (!%p5886_p12)
}
  0xd4   :  { %s5890_s12 = scalar_lea.vmem %s160_s22, 512  ;;  %p5895_p0 = scmp.lt.s32.totalorder %s160_s22, %s160_s22 }
  0xd5   :  { %p5891_p13 = scmp.ne.s32.totalorder %s160_s22, %s5890_s12  ;;  %p5896_p1 = scmp.lt.s32.totalorder %s5890_s12, %s5890_s12 }
  0xd7   :  { %p5897_p2 = por %p5896_p1, %p5895_p0 }
  0xd9   :  { %p5898_p3 = pnand %p5897_p2, %p5891_p13 }
  0xdb   :  { %5901 = shalt.err (!%p5898_p3)
}
  0xdc   :  { %165 = dma.hbm_to_vmem [thread:$0]  %s6607_s14, 512, %s160_s22, [#allocation18], %s5939_s26, %s5939_s26, %s5940_s2  }
  0xdd   :  { %s5902_s19 = scalar_lea.hbm %s6608_s15, 32 }
  0xde   :  { %p5903_p4 = scmp.ne.s32.totalorder %s6608_s15, %s5902_s19  ;;  %p5906_p5 = scmp.lt.u32.totalorder %s5902_s19, %s6608_s15 }
  0xe0   :  { %p5908_p6 = pnand %p5906_p5, %p5903_p4 }
  0xe2   :  { %5911 = shalt.err (!%p5908_p6)
}
  0xe3   :  { %s5912_s11 = scalar_lea.vmem %s6221_s5, 32  ;;  %p5917_p8 = scmp.lt.s32.totalorder %s6221_s5, %s6221_s5 }
  0xe4   :  { %p5913_p7 = scmp.ne.s32.totalorder %s6221_s5, %s5912_s11  ;;  %p5918_p9 = scmp.lt.s32.totalorder %s5912_s11, %s5912_s11 }
  0xe6   :  { %p5919_p10 = por %p5918_p9, %p5917_p8 }
  0xe8   :  { %p5920_p11 = pnand %p5919_p10, %p5913_p7 }
  0xea   :  { %5923 = shalt.err (!%p5920_p11)
}
  0xeb   :  { %177 = dma.hbm_to_vmem [thread:$0]  %s6608_s15, 32, %s6221_s5, [#allocation21], %s5944_s9, %s5944_s9, %s5945_s0  }
  0xec   :  { %5924 = dma.done.wait [#allocation4], 32  }
  0xed   :  { %5925 = vsyncadd [#allocation4], 4294967264 }
  0xee   :  { %5926 = dma.done.wait [#allocation6], 32832  }
  0xef   :  { %5927 = vsyncadd [#allocation6], 4294934464 }
  0xf0   :  { %5928 = dma.done.wait [#allocation9], 32  }
  0xf1   :  { %5929 = vsyncadd [#allocation9], 4294967264 }
  0xf2   :  { %5930 = dma.done.wait [#allocation12], 560  }
  0xf3   :  { %5931 = vsyncadd [#allocation12], 4294966736 }
  0xf4   :  { %5932 = dma.done.wait [#allocation15], 544  }
  0xf5   :  { %5933 = vsyncadd [#allocation15], 4294966752 }
  0xf6   :  { %5934 = dma.done.wait [#allocation18], 544  }
  0xf7   :  { %5935 = vsyncadd [#allocation18], 4294966752 }
  0xf8   :  { %5936 = dma.done.wait [#allocation21], 32  }
  0xf9   :  { %5937 = vsyncadd [#allocation21], 4294967264  ;;  %v5320_v1 = vld [vmem:[#allocation5 + $0x40] sm:$0xff]   ;;  %v5324_v5 = vld [vmem:[#allocation5 + $0x48] sm:$0xff]   ;;  %v5954_v22 = vmov 1966171168   ;;  %v758_v24 = vlaneseq }
  0xfa   :  { %v5321_v2 = vld [vmem:[#allocation5] sm:$0xff]   ;;  %4768 = vmatprep.subr.bf16.mxu0 %v5320_v1  ;;  %v5325_v6 = vld [vmem:[#allocation5 + $0x8] sm:$0xff]   ;;  %v5328_v9 = vld [vmem:[#allocation5 + $0x50] sm:$0xff]   ;;  %v756_v23 = vunpack.c.l.s4 %v5954_v22  ;;  %s6635_s0 = sld [smem:[#allocation29_spill]]  ;;  %vm3172_vm0 = vcmask 1042432   ;;  %vm3173_vm1 = vcmask 1043456  }
  0xfb   :  { %v5322_v3 = vld [vmem:[#allocation5 + $0xc0] sm:$0xff]   ;;  %4769 = vmatpush3.bf16.msra.mxu0 %v5321_v2  ;;  %v5326_v7 = vld [vmem:[#allocation5 + $0xc8] sm:$0xff]   ;;  %v5329_v10 = vld [vmem:[#allocation5 + $0x10] sm:$0xff]   ;;  %v6258_v30 = vshrl.u32 %v758_v24, 7  ;;  %s6636_s1 = sld [smem:[#allocation32_spill]]  ;;  %vm5957_vm2 = vmmov 0  }
  0xfc   :  { %v5323_v4 = vld [vmem:[#allocation5 + $0x80] sm:$0xff]   ;;  %4790 = vmatprep.subr.bf16.mxu1 %v5322_v3  ;;  %4770 = vmatprep.subr.bf16.mxu0 %v5324_v5  ;;  %v5327_v8 = vld [vmem:[#allocation5 + $0x88] sm:$0xff]   ;;  %v5330_v11 = vld [vmem:[#allocation5 + $0xd0] sm:$0xff]   ;;  %v757_v29 = vunpack.c.0.s8 %v756_v23  ;;  %vm3168_vm3 = vcmask 56320   ;;  %s6637_s6 = sld [smem:[#allocation35_spill]]  ;;  %vm3598_vm4 = vcmask 254976  }
  0xfd   :  { %4791 = vmatpush3.bf16.msra.mxu1 %v5323_v4  ;;  %v5331_v12 = vld [vmem:[#allocation5 + $0x90] sm:$0xff]   ;;  %v5332_v13 = vld [vmem:[#allocation5 + $0x58] sm:$0xff]   ;;  %v5336_v17 = vld [vmem:[#allocation5 + $0x60] sm:$0xff]   ;;  %vm3644_vm5 = vcmask 261120   ;;  %vm3901_vm6 = vcmask 523264   ;;  %vm4411_vm7 = vcmask 1024  }
  0xfe   :  { %4792 = vmatprep.subr.bf16.mxu1 %v5326_v7  ;;  %v5333_v14 = vld [vmem:[#allocation5 + $0x18] sm:$0xff]   ;;  %v5337_v18 = vld [vmem:[#allocation5 + $0x20] sm:$0xff]   ;;  %v5340_v21 = vld [vmem:[#allocation5 + $0x68] sm:$0xff]   ;;  %v6261_v35 = vsub.s32 %v757_v29, %v6258_v30  ;;  %s6639_s5 = sld [smem:[#allocation37_spill]] }
  0xff   :  { %4771 = vmatpush3.bf16.msra.mxu0 %v5325_v6  ;;  %v5334_v15 = vld [vmem:[#allocation5 + $0xd8] sm:$0xff]   ;;  %v5338_v19 = vld [vmem:[#allocation5 + $0xe0] sm:$0xff]   ;;  %v5341_v25 = vld [vmem:[#allocation5 + $0x28] sm:$0xff]  }
 0x100   :  { %4772 = vmatprep.subr.bf16.mxu0 %v5328_v9  ;;  %v5335_v16 = vld [vmem:[#allocation5 + $0x98] sm:$0xff]   ;;  %v5339_v20 = vld [vmem:[#allocation5 + $0xa0] sm:$0xff]   ;;  %v5342_v26 = vld [vmem:[#allocation5 + $0xe8] sm:$0xff]  }
 0x101   :  { %4793 = vmatpush3.bf16.msra.mxu1 %v5327_v8  ;;  %v5343_v27 = vld [vmem:[#allocation5 + $0xa8] sm:$0xff]   ;;  %v5344_v28 = vld [vmem:[#allocation5 + $0x70] sm:$0xff]   ;;  %v5348_v34 = vld [vmem:[#allocation5 + $0x78] sm:$0xff]  }
 0x102   :  { %4794 = vmatprep.subr.bf16.mxu1 %v5330_v11  ;;  %v5345_v31 = vld [vmem:[#allocation5 + $0x30] sm:$0xff]   ;;  %v5349_v36 = vld [vmem:[#allocation5 + $0x38] sm:$0xff]   ;;  %v5353_v42 = vld [vmem:[#allocation5 + $0x140] sm:$0xff]  }
 0x103   :  { %4773 = vmatpush3.bf16.msra.mxu0 %v5329_v10  ;;  %v5346_v32 = vld [vmem:[#allocation5 + $0xf0] sm:$0xff]   ;;  %v5350_v37 = vld [vmem:[#allocation5 + $0xf8] sm:$0xff]   ;;  %v5354_v45 = vld [vmem:[#allocation5 + $0x100] sm:$0xff]  }
 0x104   :  { %4774 = vmatprep.subr.bf16.mxu0 %v5332_v13  ;;  %v5347_v33 = vld [vmem:[#allocation5 + $0xb0] sm:$0xff]   ;;  %v227_v38 = vld [vmem:[%s6635_s0] sm:$0xff]  ;;  %v5357_v52 = vld [vmem:[#allocation5 + $0x148] sm:$0xff]  }
 0x105   :  { %4795 = vmatpush3.bf16.msra.mxu1 %v5331_v12  ;;  %v754_v39 = vcombine.high %v227_v38, %v227_v38  ;;  %v761_v40 = vrot.slane %v227_v38, %v6261_v35  ;;  %v5352_v41 = vld [vmem:[#allocation5 + $0xb8] sm:$0xff]   ;;  %v5355_v47 = vld [vmem:[#allocation5 + $0x1c0] sm:$0xff]   ;;  %v5358_v54 = vld [vmem:[#allocation5 + $0x108] sm:$0xff]  }
 0x106   :  { %4796 = vmatprep.subr.bf16.mxu1 %v5334_v15  ;;  %v5356_v49 = vld [vmem:[#allocation5 + $0x180] sm:$0xff]   ;;  %v5359_v56 = vld [vmem:[#allocation5 + $0x1c8] sm:$0xff]   ;;  %v5361_v59 = vld [vmem:[#allocation5 + $0x150] sm:$0xff]  }
 0x107   :  { %4775 = vmatpush3.bf16.msra.mxu0 %v5333_v14  ;;  %v769_v43 = vcombine.high %v761_v40, %v761_v40  ;;  %v777_v44 = vrot.slane %v761_v40, %v6261_v35  ;;  %v6269_v46 = vrot.slane %v754_v39, %v6261_v35  ;;  %v5360_v57 = vld [vmem:[#allocation5 + $0x188] sm:$0xff]   ;;  %v5362_v60 = vld [vmem:[#allocation5 + $0x110] sm:$0xff]   ;;  %v5365_v63 = vld [vmem:[#allocation5 + $0x158] sm:$0xff]  }
 0x108   :  { %4776 = vmatprep.subr.bf16.mxu0 %v5336_v17  ;;  %v5363_v61 = vld [vmem:[#allocation5 + $0x1d0] sm:$0xff]   ;;  %v5366_v0 = vld [vmem:[#allocation5 + $0x118] sm:$0xff]   ;;  %v5369_v3 = vld [vmem:[#allocation5 + $0x160] sm:$0xff]  }
 0x109   :  { %4797 = vmatpush3.bf16.msra.mxu1 %v5335_v16  ;;  %v791_v48 = vrot.slane %v769_v43, %v6261_v35  ;;  %v770_v50 = vcombine.high %v6269_v46, %v6269_v46  ;;  %v799_v51 = vcombine.high %v777_v44, %v777_v44  ;;  %v5364_v62 = vld [vmem:[#allocation5 + $0x190] sm:$0xff]   ;;  %v5367_v1 = vld [vmem:[#allocation5 + $0x1d8] sm:$0xff]   ;;  %v5370_v4 = vld [vmem:[#allocation5 + $0x120] sm:$0xff]  }
 0x10a   :  { %4798 = vmatprep.subr.bf16.mxu1 %v5338_v19  ;;  %v5368_v2 = vld [vmem:[#allocation5 + $0x198] sm:$0xff]   ;;  %v5371_v5 = vld [vmem:[#allocation5 + $0x1e0] sm:$0xff]   ;;  %v5373_v7 = vld [vmem:[#allocation5 + $0x168] sm:$0xff]   ;;  %v784_v19 = vrot.slane %v6269_v46, %v6261_v35 }
 0x10b   :  { %4777 = vmatpush3.bf16.msra.mxu0 %v5337_v18  ;;  %2550 = vmatprep.mubr.bf16.mxu0 %v791_v48  ;;  %v801_v53 = vcombine.high %v791_v48, %v791_v48  ;;  %v798_v55 = vrot.slane %v770_v50, %v6261_v35  ;;  %v5372_v6 = vld [vmem:[#allocation5 + $0x1a0] sm:$0xff]   ;;  %v5374_v8 = vld [vmem:[#allocation5 + $0x128] sm:$0xff]   ;;  %v5377_v11 = vld [vmem:[#allocation5 + $0x170] sm:$0xff]  }
 0x10c   :  { %4778 = vmatprep.subr.bf16.mxu0 %v5340_v21  ;;  %v5375_v9 = vld [vmem:[#allocation5 + $0x1e8] sm:$0xff]   ;;  %v5378_v12 = vld [vmem:[#allocation5 + $0x130] sm:$0xff]   ;;  %v5381_v15 = vld [vmem:[#allocation5 + $0x178] sm:$0xff]   ;;  %v800_v24 = vcombine.high %v784_v19, %v784_v19 }
 0x10d   :  { %4799 = vmatpush3.bf16.msra.mxu1 %v5339_v20  ;;  %2590 = vmatprep.mubr.bf16.mxu1 %v801_v53  ;;  %v802_v58 = vcombine.high %v798_v55, %v798_v55  ;;  %v5376_v10 = vld [vmem:[#allocation5 + $0x1a8] sm:$0xff]   ;;  %v5379_v13 = vld [vmem:[#allocation5 + $0x1f0] sm:$0xff]   ;;  %v5382_v16 = vld [vmem:[#allocation5 + $0x138] sm:$0xff]  }
 0x10e   :  { %4800 = vmatprep.subr.bf16.mxu1 %v5342_v26  ;;  %v5380_v14 = vld [vmem:[#allocation5 + $0x1b0] sm:$0xff]   ;;  %v5383_v17 = vld [vmem:[#allocation5 + $0x1f8] sm:$0xff]   ;;  %v5385_v20 = vld [vmem:[#allocation5 + $0x240] sm:$0xff]  }
 0x10f   :  { %4779 = vmatpush3.bf16.msra.mxu0 %v5341_v25  ;;  %v5384_v18 = vld [vmem:[#allocation5 + $0x1b8] sm:$0xff]   ;;  %v5386_v21 = vld [vmem:[#allocation5 + $0x200] sm:$0xff]   ;;  %v5389_v25 = vld [vmem:[#allocation5 + $0x248] sm:$0xff]  }
 0x110   :  { %4780 = vmatprep.subr.bf16.mxu0 %v5344_v28  ;;  %v5387_v22 = vld [vmem:[#allocation5 + $0x2c0] sm:$0xff]   ;;  %v5390_v26 = vld [vmem:[#allocation5 + $0x208] sm:$0xff]   ;;  %v5393_v29 = vld [vmem:[#allocation5 + $0x250] sm:$0xff]  }
 0x111   :  { %4801 = vmatpush3.bf16.msra.mxu1 %v5343_v27  ;;  %v5388_v23 = vld [vmem:[#allocation5 + $0x280] sm:$0xff]   ;;  %v5391_v27 = vld [vmem:[#allocation5 + $0x2c8] sm:$0xff]   ;;  %v5400_v38 = vld [vmem:[#allocation5 + $0x298] sm:$0xff]  }
 0x112   :  { %4802 = vmatprep.subr.bf16.mxu1 %v5346_v32  ;;  %v5392_v28 = vld [vmem:[#allocation5 + $0x288] sm:$0xff]   ;;  %v5395_v32 = vld [vmem:[#allocation5 + $0x2d0] sm:$0xff]   ;;  %v5401_v39 = vld [vmem:[#allocation5 + $0x260] sm:$0xff]  }
 0x113   :  { %4781 = vmatpush3.bf16.msra.mxu0 %v5345_v31  ;;  %v5394_v31 = vld [vmem:[#allocation5 + $0x210] sm:$0xff]   ;;  %v5402_v40 = vld [vmem:[#allocation5 + $0x220] sm:$0xff]   ;;  %v5405_v43 = vld [vmem:[#allocation5 + $0x268] sm:$0xff]  }
 0x114   :  { %4782 = vmatprep.subr.bf16.mxu0 %v5348_v34  ;;  %v5397_v34 = vld [vmem:[#allocation5 + $0x258] sm:$0xff]   ;;  %v5408_v46 = vld [vmem:[#allocation5 + $0x2a8] sm:$0xff]   ;;  %v5410_v48 = vld [vmem:[#allocation5 + $0x230] sm:$0xff]  }
 0x115   :  { %4803 = vmatpush3.bf16.msra.mxu1 %v5347_v33  ;;  %v5396_v33 = vld [vmem:[#allocation5 + $0x290] sm:$0xff]   ;;  %v5415_v53 = vld [vmem:[#allocation5 + $0x2f8] sm:$0xff]  }
 0x116   :  { %4804 = vmatprep.subr.bf16.mxu1 %v5350_v37  ;;  %v5399_v37 = vld [vmem:[#allocation5 + $0x2d8] sm:$0xff]   ;;  %v5412_v50 = vld [vmem:[#allocation5 + $0x2b0] sm:$0xff]  }
 0x117   :  { %4783 = vmatpush3.bf16.msra.mxu0 %v5349_v36  ;;  %v5398_v36 = vld [vmem:[#allocation5 + $0x218] sm:$0xff]  }
 0x118   :  { %4812 = vmatprep.subr.bf16.mxu0 %v5353_v42  ;;  %v5404_v42 = vld [vmem:[#allocation5 + $0x2a0] sm:$0xff]  }
 0x119   :  { %4805 = vmatpush3.bf16.msra.mxu1 %v5352_v41  ;;  %v5403_v41 = vld [vmem:[#allocation5 + $0x2e0] sm:$0xff]  }
 0x11a   :  { %4834 = vmatprep.subr.bf16.mxu1 %v5355_v47  ;;  %2551 = vmatmul.mubr.bf16.vlgmr.msra.gmra.mrb[0].mxu0 %v777_v44  ;;  %v5406_v44 = vld [vmem:[#allocation5 + $0x228] sm:$0xff]   ;;  %v5409_v47 = vld [vmem:[#allocation5 + $0x270] sm:$0xff]  }
 0x11b   :  { %4813 = vmatpush3.bf16.msra.mxu0 %v5354_v45  ;;  %2630 = vmatprep.mubr.bf16.mxu0 %v798_v55  ;;  %v5407_v45 = vld [vmem:[#allocation5 + $0x2e8] sm:$0xff]  }
 0x11c   :  { %2591 = vmatmul.mubr.bf16.vlgmr.msra.gmra.mrb[0].mxu1 %v799_v51  ;;  %4814 = vmatprep.subr.bf16.mxu0 %v5357_v52  ;;  %v5413_v51 = vld [vmem:[#allocation5 + $0x278] sm:$0xff]  }
 0x11d   :  { %4835 = vmatpush3.bf16.msra.mxu1 %v5356_v49  ;;  %2670 = vmatprep.mubr.bf16.mxu1 %v802_v58  ;;  %v5411_v49 = vld [vmem:[#allocation5 + $0x2f0] sm:$0xff]   ;;  %v5414_v52 = vld [vmem:[#allocation5 + $0x238] sm:$0xff]   ;;  %v5417_v58 = vld [vmem:[#allocation5 + $0x340] sm:$0xff]  }
 0x11e   :  { %4836 = vmatprep.subr.bf16.mxu1 %v5359_v56  ;;  %v5416_v56 = vld [vmem:[#allocation5 + $0x2b8] sm:$0xff]  }
 0x11f   :  { %4815 = vmatpush3.bf16.msra.mxu0 %v5358_v54  ;;  %v228_v54 = vld [vmem:[%s6635_s0 + $0x8] sm:$0xff] }
 0x120   :  { %4816 = vmatprep.subr.bf16.mxu0 %v5361_v59  ;;  %v810_v55 = vrot.slane %v228_v54, %v6261_v35 }
 0x121   :  { %4837 = vmatpush3.bf16.msra.mxu1 %v5360_v57  ;;  %v803_v57 = vcombine.high %v228_v54, %v228_v54  ;;  %v5465_v54 = vld [vmem:[#allocation5 + $0x498] sm:$0xff]  }
 0x122   :  { %4838 = vmatprep.subr.bf16.mxu1 %v5363_v61  ;;  %v818_v59 = vcombine.high %v810_v55, %v810_v55  ;;  %v5418_v61 = vld [vmem:[#allocation5 + $0x300] sm:$0xff]  }
 0x123   :  { %4817 = vmatpush3.bf16.msra.mxu0 %v5362_v60  ;;  %v826_v60 = vrot.slane %v810_v55, %v6261_v35  ;;  %v5466_v55 = vld [vmem:[#allocation5 + $0x460] sm:$0xff]  }
 0x124   :  { %4818 = vmatprep.subr.bf16.mxu0 %v5365_v63  ;;  %v5419_v63 = vld [vmem:[#allocation5 + $0x3c0] sm:$0xff]  }
 0x125   :  { %4839 = vmatpush3.bf16.msra.mxu1 %v5364_v62  ;;  %v6283_v62 = vrot.slane %v803_v57, %v6261_v35  ;;  %v5468_v57 = vld [vmem:[#allocation5 + $0x4e0] sm:$0xff]  }
 0x126   :  { %4840 = vmatprep.subr.bf16.mxu1 %v5367_v1  ;;  %v5420_v1 = vld [vmem:[#allocation5 + $0x380] sm:$0xff]  }
 0x127   :  { %4819 = vmatpush3.bf16.msra.mxu0 %v5366_v0  ;;  %v840_v0 = vrot.slane %v818_v59, %v6261_v35  ;;  %v5470_v59 = vld [vmem:[#allocation5 + $0x468] sm:$0xff]  }
 0x128   :  { %4820 = vmatprep.subr.bf16.mxu0 %v5369_v3  ;;  %v848_v3 = vcombine.high %v826_v60, %v826_v60 }
 0x129   :  { %4841 = vmatpush3.bf16.msra.mxu1 %v5368_v2  ;;  %v819_v2 = vcombine.high %v6283_v62, %v6283_v62 }
 0x12a   :  { %4842 = vmatprep.subr.bf16.mxu1 %v5371_v5  ;;  %v850_v5 = vcombine.high %v840_v0, %v840_v0 }
 0x12b   :  { %4821 = vmatpush3.bf16.msra.mxu0 %v5370_v4  ;;  %v5421_v4 = vld [vmem:[#allocation5 + $0x348] sm:$0xff]  }
 0x12c   :  { %4822 = vmatprep.subr.bf16.mxu0 %v5373_v7  ;;  %v847_v7 = vrot.slane %v819_v2, %v6261_v35  ;;  %v5477_v2 = vld [vmem:[#allocation5 + $0x4b0] sm:$0xff]  }
 0x12d   :  { %4843 = vmatpush3.bf16.msra.mxu1 %v5372_v6  ;;  %v5422_v6 = vld [vmem:[#allocation5 + $0x308] sm:$0xff]  }
 0x12e   :  { %4844 = vmatprep.subr.bf16.mxu1 %v5375_v9  ;;  %v5424_v9 = vld [vmem:[#allocation5 + $0x388] sm:$0xff]  }
 0x12f   :  { %4823 = vmatpush3.bf16.msra.mxu0 %v5374_v8  ;;  %v5423_v8 = vld [vmem:[#allocation5 + $0x3c8] sm:$0xff]  }
 0x130   :  { %4824 = vmatprep.subr.bf16.mxu0 %v5377_v11  ;;  %v5425_v11 = vld [vmem:[#allocation5 + $0x350] sm:$0xff]  }
 0x131   :  { %4845 = vmatpush3.bf16.msra.mxu1 %v5376_v10  ;;  %v851_v10 = vcombine.high %v847_v7, %v847_v7 }
 0x132   :  { %4846 = vmatprep.subr.bf16.mxu1 %v5379_v13  ;;  %v5427_v13 = vld [vmem:[#allocation5 + $0x3d0] sm:$0xff]  }
 0x133   :  { %4825 = vmatpush3.bf16.msra.mxu0 %v5378_v12  ;;  %v5426_v12 = vld [vmem:[#allocation5 + $0x310] sm:$0xff]  }
 0x134   :  { %4826 = vmatprep.subr.bf16.mxu0 %v5381_v15  ;;  %v5429_v15 = vld [vmem:[#allocation5 + $0x358] sm:$0xff]  }
 0x135   :  { %4847 = vmatpush3.bf16.msra.mxu1 %v5380_v14  ;;  %v5428_v14 = vld [vmem:[#allocation5 + $0x390] sm:$0xff]  }
 0x136   :  { %4848 = vmatprep.subr.bf16.mxu1 %v5383_v17  ;;  %v5431_v17 = vld [vmem:[#allocation5 + $0x3d8] sm:$0xff]  }
 0x137   :  { %4827 = vmatpush3.bf16.msra.mxu0 %v5382_v16  ;;  %v5430_v16 = vld [vmem:[#allocation5 + $0x318] sm:$0xff]  }
 0x138   :  { %4856 = vmatprep.subr.bf16.mxu0 %v5385_v20  ;;  %v5434_v20 = vld [vmem:[#allocation5 + $0x320] sm:$0xff]  }
 0x139   :  { %4849 = vmatpush3.bf16.msra.mxu1 %v5384_v18  ;;  %v5432_v18 = vld [vmem:[#allocation5 + $0x398] sm:$0xff]  }
 0x13a   :  { %2631 = vmatmul.mubr.bf16.vlgmr.msra.gmra.mrb[4].mxu0 %v784_v19  ;;  %4878 = vmatprep.subr.bf16.mxu1 %v5387_v22  ;;  %v5433_v19 = vld [vmem:[#allocation5 + $0x360] sm:$0xff]  }
 0x13b   :  { %4857 = vmatpush3.bf16.msra.mxu0 %v5386_v21  ;;  %2710 = vmatprep.mubr.bf16.mxu0 %v840_v0  ;;  %v5435_v21 = vld [vmem:[#allocation5 + $0x3e0] sm:$0xff]   ;;  %v5475_v0 = vld [vmem:[#allocation5 + $0x430] sm:$0xff]  }
 0x13c   :  { %2671 = vmatmul.mubr.bf16.vlgmr.msra.gmra.mrb[4].mxu1 %v800_v24  ;;  %4858 = vmatprep.subr.bf16.mxu0 %v5389_v25  ;;  %v5436_v22 = vld [vmem:[#allocation5 + $0x3a0] sm:$0xff]   ;;  %v5438_v24 = vld [vmem:[#allocation5 + $0x328] sm:$0xff]  }
 0x13d   :  { %4879 = vmatpush3.bf16.msra.mxu1 %v5388_v23  ;;  %2750 = vmatprep.mubr.bf16.mxu1 %v850_v5  ;;  %v5437_v23 = vld [vmem:[#allocation5 + $0x368] sm:$0xff]   ;;  %v5480_v5 = vld [vmem:[#allocation5 + $0x4f8] sm:$0xff]  }
 0x13e   :  { %4880 = vmatprep.subr.bf16.mxu1 %v5391_v27  ;;  %v5439_v25 = vld [vmem:[#allocation5 + $0x3e8] sm:$0xff]   ;;  %v5441_v27 = vld [vmem:[#allocation5 + $0x370] sm:$0xff]  }
 0x13f   :  { %4859 = vmatpush3.bf16.msra.mxu0 %v5390_v26  ;;  %v5440_v26 = vld [vmem:[#allocation5 + $0x3a8] sm:$0xff]  }
 0x140   :  { %4860 = vmatprep.subr.bf16.mxu0 %v5393_v29  ;;  %v5443_v29 = vld [vmem:[#allocation5 + $0x3f0] sm:$0xff]  }
 0x141   :  { %4881 = vmatpush3.bf16.msra.mxu1 %v5392_v28  ;;  %v5442_v28 = vld [vmem:[#allocation5 + $0x330] sm:$0xff]  }
 0x142   :  { %4882 = vmatprep.subr.bf16.mxu1 %v5395_v32  ;;  %v5445_v32 = vld [vmem:[#allocation5 + $0x378] sm:$0xff]  }
 0x143   :  { %4861 = vmatpush3.bf16.msra.mxu0 %v5394_v31  ;;  %v5444_v31 = vld [vmem:[#allocation5 + $0x3b0] sm:$0xff]  }
 0x144   :  { %4862 = vmatprep.subr.bf16.mxu0 %v5397_v34  ;;  %v5447_v34 = vld [vmem:[#allocation5 + $0x3f8] sm:$0xff]  }
 0x145   :  { %4883 = vmatpush3.bf16.msra.mxu1 %v5396_v33  ;;  %v5446_v33 = vld [vmem:[#allocation5 + $0x338] sm:$0xff]  }
 0x146   :  { %4884 = vmatprep.subr.bf16.mxu1 %v5399_v37  ;;  %v833_v37 = vrot.slane %v6283_v62, %v6261_v35  ;;  %v5473_v62 = vld [vmem:[#allocation5 + $0x4a8] sm:$0xff]  }
 0x147   :  { %4863 = vmatpush3.bf16.msra.mxu0 %v5398_v36  ;;  %v5449_v36 = vld [vmem:[#allocation5 + $0x3b8] sm:$0xff]  }
 0x148   :  { %4864 = vmatprep.subr.bf16.mxu0 %v5401_v39  ;;  %v5451_v39 = vld [vmem:[#allocation5 + $0x400] sm:$0xff]  }
 0x149   :  { %4885 = vmatpush3.bf16.msra.mxu1 %v5400_v38  ;;  %v5450_v38 = vld [vmem:[#allocation5 + $0x440] sm:$0xff]  }
 0x14a   :  { %4886 = vmatprep.subr.bf16.mxu1 %v5403_v41  ;;  %v5453_v41 = vld [vmem:[#allocation5 + $0x480] sm:$0xff]  }
 0x14b   :  { %4865 = vmatpush3.bf16.msra.mxu0 %v5402_v40  ;;  %v5452_v40 = vld [vmem:[#allocation5 + $0x4c0] sm:$0xff]  }
 0x14c   :  { %4866 = vmatprep.subr.bf16.mxu0 %v5405_v43  ;;  %v5454_v43 = vld [vmem:[#allocation5 + $0x448] sm:$0xff]  }
 0x14d   :  { %4887 = vmatpush3.bf16.msra.mxu1 %v5404_v42  ;;  %v849_v42 = vcombine.high %v833_v37, %v833_v37 }
 0x14e   :  { %4888 = vmatprep.subr.bf16.mxu1 %v5407_v45  ;;  %v5456_v45 = vld [vmem:[#allocation5 + $0x4c8] sm:$0xff]  }
 0x14f   :  { %4867 = vmatpush3.bf16.msra.mxu0 %v5406_v44  ;;  %v5455_v44 = vld [vmem:[#allocation5 + $0x408] sm:$0xff]  }
 0x150   :  { %4868 = vmatprep.subr.bf16.mxu0 %v5409_v47  ;;  %v5458_v47 = vld [vmem:[#allocation5 + $0x450] sm:$0xff]  }
 0x151   :  { %4889 = vmatpush3.bf16.msra.mxu1 %v5408_v46  ;;  %v5457_v46 = vld [vmem:[#allocation5 + $0x488] sm:$0xff]  }
 0x152   :  { %4890 = vmatprep.subr.bf16.mxu1 %v5411_v49  ;;  %v5460_v49 = vld [vmem:[#allocation5 + $0x4d0] sm:$0xff]  }
 0x153   :  { %4869 = vmatpush3.bf16.msra.mxu0 %v5410_v48  ;;  %v5459_v48 = vld [vmem:[#allocation5 + $0x410] sm:$0xff]  }
 0x154   :  { %4870 = vmatprep.subr.bf16.mxu0 %v5413_v51  ;;  %v5462_v51 = vld [vmem:[#allocation5 + $0x458] sm:$0xff]  }
 0x155   :  { %4891 = vmatpush3.bf16.msra.mxu1 %v5412_v50  ;;  %v5461_v50 = vld [vmem:[#allocation5 + $0x490] sm:$0xff]  }
 0x156   :  { %4892 = vmatprep.subr.bf16.mxu1 %v5415_v53  ;;  %v5464_v53 = vld [vmem:[#allocation5 + $0x4d8] sm:$0xff]  }
 0x157   :  { %4871 = vmatpush3.bf16.msra.mxu0 %v5414_v52  ;;  %v5463_v52 = vld [vmem:[#allocation5 + $0x418] sm:$0xff]  }
 0x158   :  { %4900 = vmatprep.subr.bf16.mxu0 %v5417_v58  ;;  %v5469_v58 = vld [vmem:[#allocation5 + $0x4a0] sm:$0xff]  }
 0x159   :  { %4893 = vmatpush3.bf16.msra.mxu1 %v5416_v56  ;;  %v5467_v56 = vld [vmem:[#allocation5 + $0x420] sm:$0xff]  }
 0x15a   :  { %2711 = vmatmul.mubr.bf16.vlgmr.msra.gmra.mrb[8].mxu0 %v826_v60  ;;  %4922 = vmatprep.subr.bf16.mxu1 %v5419_v63  ;;  %v5471_v60 = vld [vmem:[#allocation5 + $0x428] sm:$0xff]   ;;  %v5474_v63 = vld [vmem:[#allocation5 + $0x470] sm:$0xff]  }
 0x15b   :  { %4901 = vmatpush3.bf16.msra.mxu0 %v5418_v61  ;;  %2790 = vmatprep.mubr.bf16.mxu0 %v847_v7  ;;  %v5472_v61 = vld [vmem:[#allocation5 + $0x4e8] sm:$0xff]  }
 0x15c   :  { %2751 = vmatmul.mubr.bf16.vlgmr.msra.gmra.mrb[8].mxu1 %v848_v3  ;;  %4902 = vmatprep.subr.bf16.mxu0 %v5421_v4  ;;  %v5478_v3 = vld [vmem:[#allocation5 + $0x478] sm:$0xff]  }
 0x15d   :  { %4923 = vmatpush3.bf16.msra.mxu1 %v5420_v1  ;;  %2830 = vmatprep.mubr.bf16.mxu1 %v851_v10  ;;  %v5476_v1 = vld [vmem:[#allocation5 + $0x4f0] sm:$0xff]   ;;  %v5479_v4 = vld [vmem:[#allocation5 + $0x438] sm:$0xff]   ;;  %v5482_v10 = vld [vmem:[#allocation5 + $0x540] sm:$0xff]  }
 0x15e   :  { %4924 = vmatprep.subr.bf16.mxu1 %v5423_v8  ;;  %v5481_v8 = vld [vmem:[#allocation5 + $0x4b8] sm:$0xff]  }
 0x15f   :  { %4903 = vmatpush3.bf16.msra.mxu0 %v5422_v6  ;;  %v229_v6 = vld [vmem:[%s6635_s0 + $0x10] sm:$0xff] }
 0x160   :  { %4904 = vmatprep.subr.bf16.mxu0 %v5425_v11  ;;  %v859_v7 = vrot.slane %v229_v6, %v6261_v35 }
 0x161   :  { %4925 = vmatpush3.bf16.msra.mxu1 %v5424_v9  ;;  %v852_v9 = vcombine.high %v229_v6, %v229_v6  ;;  %v5530_v6 = vld [vmem:[#allocation5 + $0x698] sm:$0xff]  }
 0x162   :  { %4926 = vmatprep.subr.bf16.mxu1 %v5427_v13  ;;  %v867_v11 = vcombine.high %v859_v7, %v859_v7  ;;  %v5483_v13 = vld [vmem:[#allocation5 + $0x500] sm:$0xff]  }
 0x163   :  { %4905 = vmatpush3.bf16.msra.mxu0 %v5426_v12  ;;  %v875_v12 = vrot.slane %v859_v7, %v6261_v35  ;;  %v5531_v7 = vld [vmem:[#allocation5 + $0x660] sm:$0xff]  }
 0x164   :  { %4906 = vmatprep.subr.bf16.mxu0 %v5429_v15  ;;  %v5484_v15 = vld [vmem:[#allocation5 + $0x5c0] sm:$0xff]  }
 0x165   :  { %4927 = vmatpush3.bf16.msra.mxu1 %v5428_v14  ;;  %v6297_v14 = vrot.slane %v852_v9, %v6261_v35  ;;  %v5533_v9 = vld [vmem:[#allocation5 + $0x6e0] sm:$0xff]  }
 0x166   :  { %4928 = vmatprep.subr.bf16.mxu1 %v5431_v17  ;;  %v5485_v17 = vld [vmem:[#allocation5 + $0x580] sm:$0xff]  }
 0x167   :  { %4907 = vmatpush3.bf16.msra.mxu0 %v5430_v16  ;;  %v889_v16 = vrot.slane %v867_v11, %v6261_v35  ;;  %v5535_v11 = vld [vmem:[#allocation5 + $0x668] sm:$0xff]  }
 0x168   :  { %4908 = vmatprep.subr.bf16.mxu0 %v5433_v19  ;;  %v897_v19 = vcombine.high %v875_v12, %v875_v12 }
 0x169   :  { %4929 = vmatpush3.bf16.msra.mxu1 %v5432_v18  ;;  %v868_v18 = vcombine.high %v6297_v14, %v6297_v14 }
 0x16a   :  { %4930 = vmatprep.subr.bf16.mxu1 %v5435_v21  ;;  %v899_v21 = vcombine.high %v889_v16, %v889_v16 }
 0x16b   :  { %4909 = vmatpush3.bf16.msra.mxu0 %v5434_v20  ;;  %v5486_v20 = vld [vmem:[#allocation5 + $0x548] sm:$0xff]  }
 0x16c   :  { %4910 = vmatprep.subr.bf16.mxu0 %v5437_v23  ;;  %v896_v23 = vrot.slane %v868_v18, %v6261_v35  ;;  %v5542_v18 = vld [vmem:[#allocation5 + $0x6b0] sm:$0xff]  }
 0x16d   :  { %4931 = vmatpush3.bf16.msra.mxu1 %v5436_v22  ;;  %v5487_v22 = vld [vmem:[#allocation5 + $0x508] sm:$0xff]  }
 0x16e   :  { %4932 = vmatprep.subr.bf16.mxu1 %v5439_v25  ;;  %v5489_v25 = vld [vmem:[#allocation5 + $0x588] sm:$0xff]  }
 0x16f   :  { %4911 = vmatpush3.bf16.msra.mxu0 %v5438_v24  ;;  %v5488_v24 = vld [vmem:[#allocation5 + $0x5c8] sm:$0xff]  }
 0x170   :  { %4912 = vmatprep.subr.bf16.mxu0 %v5441_v27  ;;  %v5490_v27 = vld [vmem:[#allocation5 + $0x550] sm:$0xff]  }
 0x171   :  { %4933 = vmatpush3.bf16.msra.mxu1 %v5440_v26  ;;  %v900_v26 = vcombine.high %v896_v23, %v896_v23 }
 0x172   :  { %4934 = vmatprep.subr.bf16.mxu1 %v5443_v29  ;;  %v5492_v29 = vld [vmem:[#allocation5 + $0x5d0] sm:$0xff]  }
 0x173   :  { %4913 = vmatpush3.bf16.msra.mxu0 %v5442_v28  ;;  %v5491_v28 = vld [vmem:[#allocation5 + $0x510] sm:$0xff]  }
 0x174   :  { %4914 = vmatprep.subr.bf16.mxu0 %v5445_v32  ;;  %v5494_v32 = vld [vmem:[#allocation5 + $0x558] sm:$0xff]  }
 0x175   :  { %4935 = vmatpush3.bf16.msra.mxu1 %v5444_v31  ;;  %v5493_v31 = vld [vmem:[#allocation5 + $0x590] sm:$0xff]  }
 0x176   :  { %4936 = vmatprep.subr.bf16.mxu1 %v5447_v34  ;;  %v5496_v34 = vld [vmem:[#allocation5 + $0x5d8] sm:$0xff]  }
 0x177   :  { %4915 = vmatpush3.bf16.msra.mxu0 %v5446_v33  ;;  %v5495_v33 = vld [vmem:[#allocation5 + $0x518] sm:$0xff]  }
 0x178   :  { %4944 = vmatprep.subr.bf16.mxu0 %v5450_v38  ;;  %v5499_v38 = vld [vmem:[#allocation5 + $0x520] sm:$0xff]  }
 0x179   :  { %4937 = vmatpush3.bf16.msra.mxu1 %v5449_v36  ;;  %v5497_v36 = vld [vmem:[#allocation5 + $0x598] sm:$0xff]  }
 0x17a   :  { %2791 = vmatmul.mubr.bf16.vlgmr.msra.gmra.mrb[12].mxu0 %v833_v37  ;;  %4966 = vmatprep.subr.bf16.mxu1 %v5452_v40  ;;  %v5498_v37 = vld [vmem:[#allocation5 + $0x560] sm:$0xff]  }
 0x17b   :  { %4945 = vmatpush3.bf16.msra.mxu0 %v5451_v39  ;;  %2870 = vmatprep.mubr.bf16.mxu0 %v889_v16  ;;  %v5500_v39 = vld [vmem:[#allocation5 + $0x5e0] sm:$0xff]   ;;  %v5540_v16 = vld [vmem:[#allocation5 + $0x630] sm:$0xff]  }
 0x17c   :  { %2831 = vmatmul.mubr.bf16.vlgmr.msra.gmra.mrb[12].mxu1 %v849_v42  ;;  %4946 = vmatprep.subr.bf16.mxu0 %v5454_v43  ;;  %v5501_v40 = vld [vmem:[#allocation5 + $0x5a0] sm:$0xff]   ;;  %v5503_v42 = vld [vmem:[#allocation5 + $0x528] sm:$0xff]  }
 0x17d   :  { %4967 = vmatpush3.bf16.msra.mxu1 %v5453_v41  ;;  %2910 = vmatprep.mubr.bf16.mxu1 %v899_v21  ;;  %v5502_v41 = vld [vmem:[#allocation5 + $0x568] sm:$0xff]   ;;  %v5545_v21 = vld [vmem:[#allocation5 + $0x6f8] sm:$0xff]  }
 0x17e   :  { %4968 = vmatprep.subr.bf16.mxu1 %v5456_v45  ;;  %v5504_v43 = vld [vmem:[#allocation5 + $0x5e8] sm:$0xff]   ;;  %v5506_v45 = vld [vmem:[#allocation5 + $0x570] sm:$0xff]  }
 0x17f   :  { %4947 = vmatpush3.bf16.msra.mxu0 %v5455_v44  ;;  %v5505_v44 = vld [vmem:[#allocation5 + $0x5a8] sm:$0xff]  }
 0x180   :  { %4948 = vmatprep.subr.bf16.mxu0 %v5458_v47  ;;  %v5508_v47 = vld [vmem:[#allocation5 + $0x5f0] sm:$0xff]  }
 0x181   :  { %4969 = vmatpush3.bf16.msra.mxu1 %v5457_v46  ;;  %v5507_v46 = vld [vmem:[#allocation5 + $0x530] sm:$0xff]  }
 0x182   :  { %4970 = vmatprep.subr.bf16.mxu1 %v5460_v49  ;;  %v5510_v49 = vld [vmem:[#allocation5 + $0x578] sm:$0xff]  }
 0x183   :  { %4949 = vmatpush3.bf16.msra.mxu0 %v5459_v48  ;;  %v5509_v48 = vld [vmem:[#allocation5 + $0x5b0] sm:$0xff]  }
 0x184   :  { %4950 = vmatprep.subr.bf16.mxu0 %v5462_v51  ;;  %v5512_v51 = vld [vmem:[#allocation5 + $0x5f8] sm:$0xff]  }
 0x185   :  { %4971 = vmatpush3.bf16.msra.mxu1 %v5461_v50  ;;  %v5511_v50 = vld [vmem:[#allocation5 + $0x538] sm:$0xff]  }
 0x186   :  { %4972 = vmatprep.subr.bf16.mxu1 %v5464_v53  ;;  %v882_v53 = vrot.slane %v6297_v14, %v6261_v35  ;;  %v5538_v14 = vld [vmem:[#allocation5 + $0x6a8] sm:$0xff]  }
 0x187   :  { %4951 = vmatpush3.bf16.msra.mxu0 %v5463_v52  ;;  %v5514_v52 = vld [vmem:[#allocation5 + $0x5b8] sm:$0xff]  }
 0x188   :  { %4952 = vmatprep.subr.bf16.mxu0 %v5466_v55  ;;  %v5516_v55 = vld [vmem:[#allocation5 + $0x600] sm:$0xff]  }
 0x189   :  { %4973 = vmatpush3.bf16.msra.mxu1 %v5465_v54  ;;  %v5515_v54 = vld [vmem:[#allocation5 + $0x640] sm:$0xff]  }
 0x18a   :  { %4974 = vmatprep.subr.bf16.mxu1 %v5468_v57  ;;  %v5518_v57 = vld [vmem:[#allocation5 + $0x680] sm:$0xff]  }
 0x18b   :  { %4953 = vmatpush3.bf16.msra.mxu0 %v5467_v56  ;;  %v5517_v56 = vld [vmem:[#allocation5 + $0x6c0] sm:$0xff]  }
 0x18c   :  { %4954 = vmatprep.subr.bf16.mxu0 %v5470_v59  ;;  %v5519_v59 = vld [vmem:[#allocation5 + $0x648] sm:$0xff]  }
 0x18d   :  { %4975 = vmatpush3.bf16.msra.mxu1 %v5469_v58  ;;  %v898_v58 = vcombine.high %v882_v53, %v882_v53 }
 0x18e   :  { %4976 = vmatprep.subr.bf16.mxu1 %v5472_v61  ;;  %v5521_v61 = vld [vmem:[#allocation5 + $0x6c8] sm:$0xff]  }
 0x18f   :  { %4955 = vmatpush3.bf16.msra.mxu0 %v5471_v60  ;;  %v5520_v60 = vld [vmem:[#allocation5 + $0x608] sm:$0xff]  }
 0x190   :  { %4956 = vmatprep.subr.bf16.mxu0 %v5474_v63  ;;  %v5523_v63 = vld [vmem:[#allocation5 + $0x650] sm:$0xff]  }
 0x191   :  { %4977 = vmatpush3.bf16.msra.mxu1 %v5473_v62  ;;  %v5522_v62 = vld [vmem:[#allocation5 + $0x688] sm:$0xff]  }
 0x192   :  { %4978 = vmatprep.subr.bf16.mxu1 %v5476_v1  ;;  %v5525_v1 = vld [vmem:[#allocation5 + $0x6d0] sm:$0xff]  }
 0x193   :  { %4957 = vmatpush3.bf16.msra.mxu0 %v5475_v0  ;;  %v5524_v0 = vld [vmem:[#allocation5 + $0x610] sm:$0xff]  }
 0x194   :  { %4958 = vmatprep.subr.bf16.mxu0 %v5478_v3  ;;  %v5527_v3 = vld [vmem:[#allocation5 + $0x658] sm:$0xff]  }
 0x195   :  { %4979 = vmatpush3.bf16.msra.mxu1 %v5477_v2  ;;  %v5526_v2 = vld [vmem:[#allocation5 + $0x690] sm:$0xff]  }
 0x196   :  { %4980 = vmatprep.subr.bf16.mxu1 %v5480_v5  ;;  %v5529_v5 = vld [vmem:[#allocation5 + $0x6d8] sm:$0xff]  }
 0x197   :  { %4959 = vmatpush3.bf16.msra.mxu0 %v5479_v4  ;;  %v5528_v4 = vld [vmem:[#allocation5 + $0x618] sm:$0xff]  }
 0x198   :  { %4988 = vmatprep.subr.bf16.mxu0 %v5482_v10  ;;  %v5534_v10 = vld [vmem:[#allocation5 + $0x6a0] sm:$0xff]  }
 0x199   :  { %4981 = vmatpush3.bf16.msra.mxu1 %v5481_v8  ;;  %v5532_v8 = vld [vmem:[#allocation5 + $0x620] sm:$0xff]  }
 0x19a   :  { %2871 = vmatmul.mubr.bf16.vlgmr.msra.gmra.mrb[16].mxu0 %v875_v12  ;;  %5010 = vmatprep.subr.bf16.mxu1 %v5484_v15  ;;  %v5536_v12 = vld [vmem:[#allocation5 + $0x628] sm:$0xff]   ;;  %v5539_v15 = vld [vmem:[#allocation5 + $0x670] sm:$0xff]  }
 0x19b   :  { %4989 = vmatpush3.bf16.msra.mxu0 %v5483_v13  ;;  %2950 = vmatprep.mubr.bf16.mxu0 %v896_v23  ;;  %v5537_v13 = vld [vmem:[#allocation5 + $0x6e8] sm:$0xff]  }
 0x19c   :  { %2911 = vmatmul.mubr.bf16.vlgmr.msra.gmra.mrb[16].mxu1 %v897_v19  ;;  %4990 = vmatprep.subr.bf16.mxu0 %v5486_v20  ;;  %v5543_v19 = vld [vmem:[#allocation5 + $0x678] sm:$0xff]  }
 0x19d   :  { %5011 = vmatpush3.bf16.msra.mxu1 %v5485_v17  ;;  %2990 = vmatprep.mubr.bf16.mxu1 %v900_v26  ;;  %v5541_v17 = vld [vmem:[#allocation5 + $0x6f0] sm:$0xff]   ;;  %v5544_v20 = vld [vmem:[#allocation5 + $0x638] sm:$0xff]   ;;  %v5547_v26 = vld [vmem:[#allocation5 + $0x740] sm:$0xff]  }
 0x19e   :  { %5012 = vmatprep.subr.bf16.mxu1 %v5488_v24  ;;  %v5546_v24 = vld [vmem:[#allocation5 + $0x6b8] sm:$0xff]  }
 0x19f   :  { %4991 = vmatpush3.bf16.msra.mxu0 %v5487_v22  ;;  %v230_v22 = vld [vmem:[%s6635_s0 + $0x18] sm:$0xff]  ;;  %s5960_s0 = smov 32  }
 0x1a0   :  { %4992 = vmatprep.subr.bf16.mxu0 %v5490_v27  ;;  %v908_v23 = vrot.slane %v230_v22, %v6261_v35 }
 0x1a1   :  { %5013 = vmatpush3.bf16.msra.mxu1 %v5489_v25  ;;  %v901_v25 = vcombine.high %v230_v22, %v230_v22 }
 0x1a2   :  { %5014 = vmatprep.subr.bf16.mxu1 %v5492_v29  ;;  %v916_v27 = vcombine.high %v908_v23, %v908_v23 }
 0x1a3   :  { %4993 = vmatpush3.bf16.msra.mxu0 %v5491_v28  ;;  %v924_v28 = vrot.slane %v908_v23, %v6261_v35  ;;  %v6311_v29 = vrot.slane %v901_v25, %v6261_v35 }
 0x1a4   :  { %4994 = vmatprep.subr.bf16.mxu0 %v5494_v32  ;;  %v938_v32 = vrot.slane %v916_v27, %v6261_v35 }
 0x1a5   :  { %5015 = vmatpush3.bf16.msra.mxu1 %v5493_v31  ;;  %v5549_v31 = vld [vmem:[#allocation5 + $0x7c0] sm:$0xff]  }
 0x1a6   :  { %5016 = vmatprep.subr.bf16.mxu1 %v5496_v34  ;;  %v917_v34 = vcombine.high %v6311_v29, %v6311_v29 }
 0x1a7   :  { %4995 = vmatpush3.bf16.msra.mxu0 %v5495_v33  ;;  %v5548_v33 = vld [vmem:[#allocation5 + $0x700] sm:$0xff]  }
 0x1a8   :  { %4996 = vmatprep.subr.bf16.mxu0 %v5498_v37  ;;  %v5551_v37 = vld [vmem:[#allocation5 + $0x748] sm:$0xff]  }
 0x1a9   :  { %5017 = vmatpush3.bf16.msra.mxu1 %v5497_v36  ;;  %v946_v36 = vcombine.high %v924_v28, %v924_v28 }
 0x1aa   :  { %5018 = vmatprep.subr.bf16.mxu1 %v5500_v39  ;;  %v5550_v39 = vld [vmem:[#allocation5 + $0x780] sm:$0xff]  }
 0x1ab   :  { %4997 = vmatpush3.bf16.msra.mxu0 %v5499_v38  ;;  %v948_v38 = vcombine.high %v938_v32, %v938_v32 }
 0x1ac   :  { %4998 = vmatprep.subr.bf16.mxu0 %v5502_v41  ;;  %v5553_v41 = vld [vmem:[#allocation5 + $0x7c8] sm:$0xff]  }
 0x1ad   :  { %5019 = vmatpush3.bf16.msra.mxu1 %v5501_v40  ;;  %v945_v40 = vrot.slane %v917_v34, %v6261_v35 }
 0x1ae   :  { %5020 = vmatprep.subr.bf16.mxu1 %v5504_v43 }
 0x1af   :  { %4999 = vmatpush3.bf16.msra.mxu0 %v5503_v42  ;;  %v5552_v42 = vld [vmem:[#allocation5 + $0x708] sm:$0xff]   ;;  %v949_v43 = vcombine.high %v945_v40, %v945_v40 }
 0x1b0   :  { %5000 = vmatprep.subr.bf16.mxu0 %v5506_v45  ;;  %v5554_v45 = vld [vmem:[#allocation5 + $0x788] sm:$0xff]  }
 0x1b1   :  { %5021 = vmatpush3.bf16.msra.mxu1 %v5505_v44  ;;  %v5555_v44 = vld [vmem:[#allocation5 + $0x750] sm:$0xff]  }
 0x1b2   :  { %5022 = vmatprep.subr.bf16.mxu1 %v5508_v47  ;;  %v5556_v47 = vld [vmem:[#allocation5 + $0x710] sm:$0xff]  }
 0x1b3   :  { %5001 = vmatpush3.bf16.msra.mxu0 %v5507_v46  ;;  %v5557_v46 = vld [vmem:[#allocation5 + $0x7d0] sm:$0xff]  }
 0x1b4   :  { %5002 = vmatprep.subr.bf16.mxu0 %v5510_v49  ;;  %v5558_v49 = vld [vmem:[#allocation5 + $0x790] sm:$0xff]  }
 0x1b5   :  { %5023 = vmatpush3.bf16.msra.mxu1 %v5509_v48  ;;  %v5559_v48 = vld [vmem:[#allocation5 + $0x758] sm:$0xff]  }
 0x1b6   :  { %5024 = vmatprep.subr.bf16.mxu1 %v5512_v51  ;;  %v5560_v51 = vld [vmem:[#allocation5 + $0x718] sm:$0xff]  }
 0x1b7   :  { %5003 = vmatpush3.bf16.msra.mxu0 %v5511_v50  ;;  %v5561_v50 = vld [vmem:[#allocation5 + $0x7d8] sm:$0xff]  }
 0x1b8   :  { %5032 = vmatprep.subr.bf16.mxu0 %v5515_v54  ;;  %v5565_v54 = vld [vmem:[#allocation5 + $0x7e0] sm:$0xff]  }
 0x1b9   :  { %5025 = vmatpush3.bf16.msra.mxu1 %v5514_v52  ;;  %v5563_v52 = vld [vmem:[#allocation5 + $0x760] sm:$0xff]  }
 0x1ba   :  { %2951 = vmatmul.mubr.bf16.vlgmr.msra.gmra.mrb[20].mxu0 %v882_v53  ;;  %5054 = vmatprep.subr.bf16.mxu1 %v5517_v56  ;;  %v5562_v53 = vld [vmem:[#allocation5 + $0x798] sm:$0xff]   ;;  %v5567_v56 = vld [vmem:[#allocation5 + $0x768] sm:$0xff]  }
 0x1bb   :  { %5033 = vmatpush3.bf16.msra.mxu0 %v5516_v55  ;;  %3030 = vmatprep.mubr.bf16.mxu0 %v938_v32  ;;  %v5564_v55 = vld [vmem:[#allocation5 + $0x720] sm:$0xff]  }
 0x1bc   :  { %2991 = vmatmul.mubr.bf16.vlgmr.msra.gmra.mrb[20].mxu1 %v898_v58  ;;  %5034 = vmatprep.subr.bf16.mxu0 %v5519_v59  ;;  %v5569_v58 = vld [vmem:[#allocation5 + $0x7e8] sm:$0xff]   ;;  %v4424_v59 = vld [vmem:[%s6636_s1] ss:$0 sm:$0xff] }
 0x1bd   :  { %5055 = vmatpush3.bf16.msra.mxu1 %v5518_v57  ;;  %3070 = vmatprep.mubr.bf16.mxu1 %v948_v38  ;;  %v5566_v57 = vld [vmem:[#allocation5 + $0x7a0] sm:$0xff]  }
 0x1be   :  { %5056 = vmatprep.subr.bf16.mxu1 %v5521_v61  ;;  %v5955_v61 = vmov 65535  }
 0x1bf   :  { %5035 = vmatpush3.bf16.msra.mxu0 %v5520_v60  ;;  %v5568_v60 = vld [vmem:[#allocation5 + $0x728] sm:$0xff]  }
 0x1c0   :  { %5036 = vmatprep.subr.bf16.mxu0 %v5523_v63 }
 0x1c1   :  { %5057 = vmatpush3.bf16.msra.mxu1 %v5522_v62  ;;  %v3174_v62 = vsel %vm3172_vm0, 4294967295, %v5955_v61 }
 0x1c2   :  { %5058 = vmatprep.subr.bf16.mxu1 %v5525_v1  ;;  %v3175_v22 = vsel %vm3173_vm1, %v3174_v62, 0 }
 0x1c3   :  { %5037 = vmatpush3.bf16.msra.mxu0 %v5524_v0  ;;  %v5571_v0 = vld [vmem:[#allocation5 + $0x770] sm:$0xff]  }
 0x1c4   :  { %5038 = vmatprep.subr.bf16.mxu0 %v5527_v3 }
 0x1c5   :  { %5059 = vmatpush3.bf16.msra.mxu1 %v5526_v2  ;;  %v5570_v2 = vld [vmem:[#allocation5 + $0x7a8] sm:$0xff]  }
 0x1c6   :  { %5060 = vmatprep.subr.bf16.mxu1 %v5529_v5 }
 0x1c7   :  { %5039 = vmatpush3.bf16.msra.mxu0 %v5528_v4 }
 0x1c8   :  { %5040 = vmatprep.subr.bf16.mxu0 %v5531_v7  ;;  %v5573_v7 = vld [vmem:[#allocation5 + $0x7f0] sm:$0xff]  }
 0x1c9   :  { %5061 = vmatpush3.bf16.msra.mxu1 %v5530_v6  ;;  %v5572_v6 = vld [vmem:[#allocation5 + $0x730] sm:$0xff]  }
 0x1ca   :  { %5062 = vmatprep.subr.bf16.mxu1 %v5533_v9 }
 0x1cb   :  { %5041 = vmatpush3.bf16.msra.mxu0 %v5532_v8 }
 0x1cc   :  { %5042 = vmatprep.subr.bf16.mxu0 %v5535_v11 }
 0x1cd   :  { %5063 = vmatpush3.bf16.msra.mxu1 %v5534_v10 }
 0x1ce   :  { %5064 = vmatprep.subr.bf16.mxu1 %v5537_v13 }
 0x1cf   :  { %5043 = vmatpush3.bf16.msra.mxu0 %v5536_v12  ;;  %v5575_v12 = vld [vmem:[#allocation5 + $0x778] sm:$0xff]  }
 0x1d0   :  { %5044 = vmatprep.subr.bf16.mxu0 %v5539_v15 }
 0x1d1   :  { %5065 = vmatpush3.bf16.msra.mxu1 %v5538_v14  ;;  %v5574_v14 = vld [vmem:[#allocation5 + $0x7b0] sm:$0xff]  }
 0x1d2   :  { %5066 = vmatprep.subr.bf16.mxu1 %v5541_v17  ;;  %v5577_v17 = vld [vmem:[#allocation5 + $0x7f8] sm:$0xff]  }
 0x1d3   :  { %5045 = vmatpush3.bf16.msra.mxu0 %v5540_v16 }
 0x1d4   :  { %5046 = vmatprep.subr.bf16.mxu0 %v5543_v19  ;;  %v5579_v19 = vld [vmem:[#allocation5 + $0x7b8] sm:$0xff]  }
 0x1d5   :  { %5067 = vmatpush3.bf16.msra.mxu1 %v5542_v18  ;;  %v5576_v18 = vld [vmem:[#allocation5 + $0x738] sm:$0xff]  }
 0x1d6   :  { %5068 = vmatprep.subr.bf16.mxu1 %v5545_v21  ;;  %v3160_v21 = vld [vmem:[#allocation7] sm:$0xf] }
 0x1d7   :  { %5047 = vmatpush3.bf16.msra.mxu0 %v5544_v20  ;;  %v931_v20 = vrot.slane %v6311_v29, %v6261_v35  ;;  %v3177_v23 = vand.u32 %v3175_v22, %v3160_v21  ;;  %v5612_v21 = vld [vmem:[%s6601_s8 + $0x94] ss:$12 sps:$4 sm:$0xff]   ;;  %v5610_v22 = vld [vmem:[%s6601_s8 + $0x90] ss:$12 sps:$4 sm:$0xff]  }
 0x1d8   :  { %5076 = vmatprep.subr.bf16.mxu0 %v5547_v26  ;;  %v3158_v26 = vld [vmem:[#allocation3] sm:$0x3] }
 0x1d9   :  { %5069 = vmatpush3.bf16.msra.mxu1 %v5546_v24  ;;  %v5956_v24 = vmov 0.0   ;;  %v947_v25 = vcombine.high %v931_v20, %v931_v20  ;;  %v3159_v35 = vpack.c.bf16 %v3158_v26, %v3158_v26 }
 0x1da   :  { %5098 = vmatprep.subr.bf16.mxu1 %v5549_v31  ;;  %3031 = vmatmul.mubr.bf16.vlgmr.msra.gmra.mrb[24].mxu0 %v924_v28 }
 0x1db   :  { %5077 = vmatpush3.bf16.msra.mxu0 %v5548_v33  ;;  %3110 = vmatprep.mubr.bf16.mxu0 %v945_v40 }
 0x1dc   :  { %3071 = vmatmul.mubr.bf16.vlgmr.msra.gmra.mrb[24].mxu1 %v946_v36  ;;  %5078 = vmatprep.subr.bf16.mxu0 %v5551_v37 }
 0x1dd   :  { %5099 = vmatpush3.bf16.msra.mxu1 %v5550_v39  ;;  %3150 = vmatprep.mubr.bf16.mxu1 %v949_v43 }
 0x1de   :  { %5100 = vmatprep.subr.bf16.mxu1 %v5553_v41 }
 0x1df   :  { %5079 = vmatpush3.bf16.msra.mxu0 %v5552_v42 }
 0x1e0   :  { %5080 = vmatprep.subr.bf16.mxu0 %v5555_v44 }
 0x1e1   :  { %5101 = vmatpush3.bf16.msra.mxu1 %v5554_v45 }
 0x1e2   :  { %5102 = vmatprep.subr.bf16.mxu1 %v5557_v46 }
 0x1e3   :  { %5081 = vmatpush3.bf16.msra.mxu0 %v5556_v47 }
 0x1e4   :  { %5082 = vmatprep.subr.bf16.mxu0 %v5559_v48 }
 0x1e5   :  { %5103 = vmatpush3.bf16.msra.mxu1 %v5558_v49 }
 0x1e6   :  { %5104 = vmatprep.subr.bf16.mxu1 %v5561_v50 }
 0x1e7   :  { %5083 = vmatpush3.bf16.msra.mxu0 %v5560_v51 }
 0x1e8   :  { %5084 = vmatprep.subr.bf16.mxu0 %v5563_v52 }
 0x1e9   :  { %5105 = vmatpush3.bf16.msra.mxu1 %v5562_v53  ;;  %v5580_v53 = vld [vmem:[%s6637_s6] sm:$0xff]  }
 0x1ea   :  { %5106 = vmatprep.subr.bf16.mxu1 %v5565_v54  ;;  %v5581_v54 = vld [vmem:[%s6637_s6 + $0x8] sm:$0xff]  }
 0x1eb   :  { %5085 = vmatpush3.bf16.msra.mxu0 %v5564_v55  ;;  %v5582_v55 = vld [vmem:[%s6637_s6 + $0x10] sm:$0xff]  }
 0x1ec   :  { %5086 = vmatprep.subr.bf16.mxu0 %v5567_v56  ;;  %v5583_v56 = vld [vmem:[%s6637_s6 + $0x18] sm:$0xff]  }
 0x1ed   :  { %v4784_v63 = vpop.f32.mrb[0].mxu0  ;;  %5107 = vmatpush3.bf16.msra.mxu1 %v5566_v57  ;;  %v5584_v57 = vld [vmem:[%s6637_s6 + $0x20] sm:$0xff]  }
 0x1ee   :  { %v4785_v1 = vpop.f32.mrb[1].mxu0  ;;  %5108 = vmatprep.subr.bf16.mxu1 %v5569_v58 }
 0x1ef   :  { %v4786_v3 = vadd.f32 %v4785_v1, %v4784_v63  ;;  %v4787_v4 = vpop.f32.mrb[2].mxu0  ;;  %v4806_v5 = vpop.f32.mrb[0].mxu1  ;;  %5087 = vmatpush3.bf16.msra.mxu0 %v5568_v60  ;;  %v5585_v63 = vld [vmem:[%s6637_s6 + $0x28] sm:$0xff]  }
 0x1f0   :  { %v4788_v8 = vpop.f32.mrb[3].mxu0  ;;  %v4807_v9 = vpop.f32.mrb[1].mxu1  ;;  %5088 = vmatprep.subr.bf16.mxu0 %v5571_v0 }
 0x1f1   :  { %v2553_v10 = vadd.f32 %v4786_v3, %v4424_v59  ;;  %v4808_v11 = vadd.f32 %v4807_v9, %v4806_v5  ;;  %v4809_v13 = vpop.f32.mrb[2].mxu1  ;;  %5109 = vmatpush3.bf16.msra.mxu1 %v5570_v2  ;;  %v5586_v8 = vld [vmem:[%s6601_s8] ss:$12 sps:$4 sm:$0xff]   ;;  %v5589_v9 = vld [vmem:[%s6637_s6 + $0x30] sm:$0xff]  }
 0x1f2   :  { %v4810_v15 = vpop.f32.mrb[3].mxu1  ;;  %5110 = vmatprep.subr.bf16.mxu1 %v5573_v7  ;;  %v5596_v13 = vld [vmem:[%s6601_s8 + $0x34] ss:$12 sps:$4 sm:$0xff]  }
 0x1f3   :  { %v2593_v16 = vadd.f32 %v4808_v11, %v2553_v10  ;;  %5089 = vmatpush3.bf16.msra.mxu0 %v5572_v6  ;;  %v5588_v6 = vld [vmem:[%s6601_s8 + $0x4] ss:$12 sps:$4 sm:$0xff]   ;;  %v5592_v10 = vld [vmem:[%s6601_s8 + $0x1c] ss:$12 sps:$4 sm:$0xff]   ;;  %v5600_v15 = vld [vmem:[%s6601_s8 + $0x4c] ss:$12 sps:$4 sm:$0xff]  }
 0x1f4   :  { %5090 = vmatprep.subr.bf16.mxu0 %v5575_v12  ;;  %v5590_v11 = vld [vmem:[%s6601_s8 + $0x18] ss:$12 sps:$4 sm:$0xff]  }
 0x1f5   :  { %5111 = vmatpush3.bf16.msra.mxu1 %v5574_v14  ;;  %v5593_v12 = vld [vmem:[%s6637_s6 + $0x38] sm:$0xff]  }
 0x1f6   :  { %5112 = vmatprep.subr.bf16.mxu1 %v5577_v17  ;;  %v5594_v14 = vld [vmem:[%s6601_s8 + $0x30] ss:$12 sps:$4 sm:$0xff]  }
 0x1f7   :  { %5091 = vmatpush3.bf16.msra.mxu0 %v5576_v18  ;;  %v5604_v17 = vld [vmem:[%s6601_s8 + $0x64] ss:$12 sps:$4 sm:$0xff]   ;;  %v5602_v18 = vld [vmem:[%s6601_s8 + $0x60] ss:$12 sps:$4 sm:$0xff]  }
 0x1f8   :  { %5171 = vmatprep.subr.bf16.mxu0 %v5956_v24 }
 0x1f9   :  { %5113 = vmatpush3.bf16.msra.mxu1 %v5579_v19  ;;  %v5608_v19 = vld [vmem:[%s6601_s8 + $0x7c] ss:$12 sps:$4 sm:$0xff]  }
 0x1fa   :  { %3111 = vmatmul.mubr.bf16.vlgmr.msra.gmra.mrb[28].mxu0 %v931_v20  ;;  %5177 = vmatprep.subr.bf16.mxu1 %v5956_v24  ;;  %v5606_v20 = vld [vmem:[%s6601_s8 + $0x78] ss:$12 sps:$4 sm:$0xff]  }
 0x1fb   :  { %5172 = vmatpush3.bf16.msra.mxu0 %v3177_v23  ;;  %5173 = vmatprep.mubr.msk.bf16.mxu0 %vm5957_vm2, %v5956_v24 }
 0x1fc   :  { %3151 = vmatmul.mubr.bf16.vlgmr.msra.gmra.mrb[28].mxu1 %v947_v25  ;;  %3517 = vmatprep.subr.bf16.mxu0 %v5588_v6 }
 0x1fd   :  { %5193 = vmatprep.mubr.msk.bf16.mxu1 %vm5957_vm2, %v5956_v24  ;;  %5178 = vmatpush3.bf16.msra.mxu1 %v5580_v53 }
 0x1fe   :  { %5179 = vmatprep.subr.bf16.mxu1 %v5956_v24 }
 0x201   :  { %5180 = vmatpush3.bf16.msra.mxu1 %v5581_v54 }
 0x202   :  { %5174 = vmatmul.mubr.msk.bf16.vlgmr.msra.gmra.mrb[32].mxu0 %vm3168_vm3, %v3159_v35  ;;  %5181 = vmatprep.subr.bf16.mxu1 %v5956_v24 }
 0x203   :  { %3518 = vmatpush1.bf16.msra.mxu0 %v5586_v8 }
 0x204   :  { %3519 = vmatprep.subr.bf16.mxu0 %v5592_v10 }
 0x205   :  { %5182 = vmatpush3.bf16.msra.mxu1 %v5582_v55 }
 0x206   :  { %5183 = vmatprep.subr.bf16.mxu1 %v5956_v24 }
 0x207   :  { %3520 = vmatpush1.bf16.msra.mxu0 %v5590_v11 }
 0x208   :  { %3521 = vmatprep.subr.bf16.mxu0 %v5596_v13 }
 0x209   :  { %5184 = vmatpush3.bf16.msra.mxu1 %v5583_v56 }
 0x20a   :  { %5185 = vmatprep.subr.bf16.mxu1 %v5956_v24 }
 0x20b   :  { %3522 = vmatpush1.bf16.msra.mxu0 %v5594_v14 }
 0x20c   :  { %3523 = vmatprep.subr.bf16.mxu0 %v5600_v15 }
 0x20d   :  { %v4828_v27 = vpop.f32.mrb[4].mxu0  ;;  %5186 = vmatpush3.bf16.msra.mxu1 %v5584_v57 }
 0x20e   :  { %v4829_v28 = vpop.f32.mrb[5].mxu0  ;;  %5187 = vmatprep.subr.bf16.mxu1 %v5956_v24 }
 0x20f   :  { %v4830_v29 = vadd.f32 %v4829_v28, %v4828_v27  ;;  %v4831_v31 = vpop.f32.mrb[6].mxu0  ;;  %v4850_v32 = vpop.f32.mrb[4].mxu1  ;;  %v5616_v28 = vld [vmem:[%s6601_s8 + $0xac] ss:$12 sps:$4 sm:$0xff]  }
 0x210   :  { %v4832_v33 = vpop.f32.mrb[7].mxu0  ;;  %v4851_v34 = vpop.f32.mrb[5].mxu1 }
 0x211   :  { %v2633_v36 = vadd.f32 %v4830_v29, %v2593_v16  ;;  %v4852_v37 = vadd.f32 %v4851_v34, %v4850_v32  ;;  %v4853_v38 = vpop.f32.mrb[6].mxu1  ;;  %5188 = vmatpush3.bf16.msra.mxu1 %v5585_v63  ;;  %v5598_v16 = vld [vmem:[%s6601_s8 + $0x48] ss:$12 sps:$4 sm:$0xff]  }
 0x212   :  { %v4854_v39 = vpop.f32.mrb[7].mxu1  ;;  %5189 = vmatprep.subr.bf16.mxu1 %v5956_v24  ;;  %3524 = vmatpush1.bf16.msra.mxu0 %v5598_v16  ;;  %v5614_v32 = vld [vmem:[%s6601_s8 + $0xa8] ss:$12 sps:$4 sm:$0xff]  }
 0x213   :  { %v2673_v40 = vadd.f32 %v4852_v37, %v2633_v36  ;;  %3525 = vmatprep.subr.bf16.mxu0 %v5604_v17  ;;  %v5958_v39 = vmov 0  }
 0x214   :  { %3549 = vmatprep.mubr.bf16.mxu0 %v5958_v39 }
 0x215   :  { %5190 = vmatpush3.bf16.msra.mxu1 %v5589_v9 }
 0x216   :  { %5191 = vmatprep.subr.bf16.mxu1 %v5956_v24  ;;  %3526 = vmatpush1.bf16.msra.mxu0 %v5602_v18 }
 0x217   :  { %3527 = vmatprep.subr.bf16.mxu0 %v5608_v19 }
 0x219   :  { %5192 = vmatpush3.bf16.msra.mxu1 %v5593_v12  ;;  %v4681_v12 = vld [vmem:[#allocation8] ss:$0 sm:$0xff] }
 0x21a   :  { %5197 = vmatprep.subr.bf16.mxu1 %v5956_v24  ;;  %3528 = vmatpush1.bf16.msra.mxu0 %v5606_v20  ;;  %v5597_v20 = vld [vmem:[%s6601_s8 + $0x8] ss:$12 sps:$4 sm:$0xff]  }
 0x21b   :  { %3529 = vmatprep.subr.bf16.mxu0 %v5612_v21 }
 0x21e   :  { %3530 = vmatpush1.bf16.msra.mxu0 %v5610_v22  ;;  %v5601_v22 = vld [vmem:[%s6601_s8 + $0x20] ss:$12 sps:$4 sm:$0xff]  }
 0x21f   :  { %3531 = vmatprep.subr.bf16.mxu0 %v5616_v28  ;;  %v5617_v28 = vld [vmem:[%s6601_s8 + $0x80] ss:$12 sps:$4 sm:$0xff]  }
 0x222   :  { %3532 = vmatpush1.bf16.msra.mxu0 %v5614_v32 }
 0x223   :  { %5217 = vmatprep.subr.bf16.mxu0 %v5956_v24 }
 0x22d   :  { %v4872_v41 = vpop.f32.mrb[8].mxu0 }
 0x22e   :  { %v4873_v42 = vpop.f32.mrb[9].mxu0 }
 0x22f   :  { %v4874_v43 = vadd.f32 %v4873_v42, %v4872_v41  ;;  %v4875_v44 = vpop.f32.mrb[10].mxu0  ;;  %v4894_v45 = vpop.f32.mrb[8].mxu1 }
 0x230   :  { %v4876_v46 = vpop.f32.mrb[11].mxu0  ;;  %v4895_v47 = vpop.f32.mrb[9].mxu1 }
 0x231   :  { %v2713_v48 = vadd.f32 %v4874_v43, %v2673_v40  ;;  %v4896_v49 = vadd.f32 %v4895_v47, %v4894_v45  ;;  %v4897_v50 = vpop.f32.mrb[10].mxu1 }
 0x232   :  { %v4898_v51 = vpop.f32.mrb[11].mxu1 }
 0x233   :  { %v2753_v52 = vadd.f32 %v4896_v49, %v2713_v48 }
 0x24d   :  { %v4916_v58 = vpop.f32.mrb[12].mxu0 }
 0x24e   :  { %v4917_v59 = vpop.f32.mrb[13].mxu0 }
 0x24f   :  { %v4918_v60 = vadd.f32 %v4917_v59, %v4916_v58  ;;  %v4919_v61 = vpop.f32.mrb[14].mxu0  ;;  %v4938_v62 = vpop.f32.mrb[12].mxu1 }
 0x250   :  { %v4920_v0 = vpop.f32.mrb[15].mxu0  ;;  %v4939_v1 = vpop.f32.mrb[13].mxu1 }
 0x251   :  { %v2793_v2 = vadd.f32 %v4918_v60, %v2753_v52  ;;  %v4940_v3 = vadd.f32 %v4939_v1, %v4938_v62  ;;  %v4941_v4 = vpop.f32.mrb[14].mxu1 }
 0x252   :  { %v4942_v5 = vpop.f32.mrb[15].mxu1 }
 0x253   :  { %v2833_v7 = vadd.f32 %v4940_v3, %v2793_v2 }
 0x26d   :  { %v4960_v23 = vpop.f32.mrb[16].mxu0 }
 0x26e   :  { %v4961_v25 = vpop.f32.mrb[17].mxu0 }
 0x26f   :  { %v4962_v26 = vadd.f32 %v4961_v25, %v4960_v23  ;;  %v4963_v35 = vpop.f32.mrb[18].mxu0  ;;  %v4982_v27 = vpop.f32.mrb[16].mxu1  ;;  %v5605_v25 = vld [vmem:[%s6601_s8 + $0x38] ss:$12 sps:$4 sm:$0xff]  }
 0x270   :  { %v4964_v29 = vpop.f32.mrb[19].mxu0  ;;  %v4983_v31 = vpop.f32.mrb[17].mxu1  ;;  %v5609_v35 = vld [vmem:[%s6601_s8 + $0x50] ss:$12 sps:$4 sm:$0xff]  }
 0x271   :  { %v2873_v33 = vadd.f32 %v4962_v26, %v2833_v7  ;;  %v4984_v34 = vadd.f32 %v4983_v31, %v4982_v27  ;;  %v4985_v36 = vpop.f32.mrb[18].mxu1  ;;  %v5613_v27 = vld [vmem:[%s6601_s8 + $0x68] ss:$12 sps:$4 sm:$0xff]  }
 0x272   :  { %v4986_v37 = vpop.f32.mrb[19].mxu1  ;;  %v4683_v36 = vld [vmem:[#allocation10] ss:$0 sm:$0xff] }
 0x273   :  { %v2913_v38 = vadd.f32 %v4984_v34, %v2873_v33  ;;  %v5618_v33 = vld [vmem:[%s6601_s8 + $0x98] ss:$12 sps:$4 sm:$0xff]   ;;  %v5619_v34 = vld [vmem:[%s6601_s8 + $0xb0] ss:$12 sps:$4 sm:$0xff]   ;;  %s5959_s8 = smov 96  }
 0x28d   :  { %v5004_v40 = vpop.f32.mrb[20].mxu0 }
 0x28e   :  { %v5005_v41 = vpop.f32.mrb[21].mxu0 }
 0x28f   :  { %v5006_v42 = vadd.f32 %v5005_v41, %v5004_v40  ;;  %v5007_v43 = vpop.f32.mrb[22].mxu0  ;;  %v5026_v44 = vpop.f32.mrb[20].mxu1 }
 0x290   :  { %v5008_v45 = vpop.f32.mrb[23].mxu0  ;;  %v5027_v46 = vpop.f32.mrb[21].mxu1  ;;  %v3376_v43 = vsub.s32 0, %v6258_v30 }
 0x291   :  { %v2953_v47 = vadd.f32 %v5006_v42, %v2913_v38  ;;  %v5028_v48 = vadd.f32 %v5027_v46, %v5026_v44  ;;  %v5029_v49 = vpop.f32.mrb[22].mxu1  ;;  %v3372_v44 = vld [vmem:[#allocation11] sm:$0x7]  ;;  %v3380_v45 = vsub.s32 1, %v6258_v30 }
 0x292   :  { %v5030_v50 = vpop.f32.mrb[23].mxu1  ;;  %v3377_v46 = vrot.slane %v3372_v44, %v3376_v43 }
 0x293   :  { %v2993_v51 = vadd.f32 %v5028_v48, %v2953_v47  ;;  %v3381_v47 = vrot.slane %v3372_v44, %v3380_v45 }
 0x2ad   :  { %v5048_v52 = vpop.f32.mrb[24].mxu0 }
 0x2ae   :  { %v5049_v53 = vpop.f32.mrb[25].mxu0 }
 0x2af   :  { %v5050_v54 = vadd.f32 %v5049_v53, %v5048_v52  ;;  %v5051_v55 = vpop.f32.mrb[26].mxu0  ;;  %v5070_v56 = vpop.f32.mrb[24].mxu1  ;;  %v3384_v53 = vsub.s32 2, %v6258_v30 }
 0x2b0   :  { %v5052_v57 = vpop.f32.mrb[27].mxu0  ;;  %v5071_v58 = vpop.f32.mrb[25].mxu1 }
 0x2b1   :  { %v3033_v59 = vadd.f32 %v5050_v54, %v2993_v51  ;;  %v5072_v60 = vadd.f32 %v5071_v58, %v5070_v56  ;;  %v5073_v61 = vpop.f32.mrb[26].mxu1  ;;  %v3385_v56 = vrot.slane %v3372_v44, %v3384_v53  ;;  %v5626_v53 = vld [vmem:[%s6609_s16] sm:$0xff]  }
 0x2b2   :  { %v5074_v62 = vpop.f32.mrb[27].mxu1 }
 0x2b3   :  { %v3073_v63 = vadd.f32 %v5072_v60, %v3033_v59 }
 0x2cd   :  { %v5092_v0 = vpop.f32.mrb[28].mxu0 }
 0x2ce   :  { %v5093_v1 = vpop.f32.mrb[29].mxu0 }
 0x2cf   :  { %v5094_v2 = vadd.f32 %v5093_v1, %v5092_v0  ;;  %v5095_v3 = vpop.f32.mrb[30].mxu0  ;;  %v5114_v4 = vpop.f32.mrb[28].mxu1 }
 0x2d0   :  { %v5096_v5 = vpop.f32.mrb[31].mxu0  ;;  %v5115_v6 = vpop.f32.mrb[29].mxu1  ;;  %v5621_v3 = vld [vmem:[#allocation13 + $0x8] sm:$0xff]  }
 0x2d1   :  { %v3113_v7 = vadd.f32 %v5094_v2, %v3073_v63  ;;  %v5116_v8 = vadd.f32 %v5115_v6, %v5114_v4  ;;  %v5117_v9 = vpop.f32.mrb[30].mxu1  ;;  %v5620_v2 = vld [vmem:[#allocation13] sm:$0xff]  }
 0x2d2   :  { %v5118_v10 = vpop.f32.mrb[31].mxu1 }
 0x2d3   :  { %v3153_v11 = vadd.f32 %v5116_v8, %v3113_v7 }
 0x2d5   :  { %v4692_v13 = vmul.f32 -1.442695, %v3153_v11  ;;  %v3213_v14 = vpop.f32.mrb[32].mxu0 }
 0x2d6   :  { %v3214_v15 = vadd.f32 %v4681_v12, %v3213_v14  ;;  %v5175_v16 = vpop.f32.mrb[33].mxu0  ;;  %v5622_v12 = vld [vmem:[#allocation16] sm:$0xff]   ;;  %v5623_v14 = vld [vmem:[#allocation16 + $0x8] sm:$0xff]  }
 0x2d7   :  { %5642 = vpow2.f32 %v4692_v13  ;;  %v3216_v17 = vpop.f32.mrb[34].mxu0 }
 0x2d8   :  { %v3219_v18 = vmax.f32 %v3214_v15, 0.0  ;;  %v5176_v19 = vpop.f32.mrb[35].mxu0  ;;  %v4717_v15 = vld [vmem:[#allocation14] ss:$0 sm:$0xff] }
 0x2da   :  { %v3220_v21 = vpack.c.bf16 %v3219_v18, %v3219_v18 }
 0x2dc   :  { %5194 = vmatmul.mubr.bf16.vlgmr.msra.gmra.mrb[32].mxu1 %v3220_v21 }
 0x2dd   :  { %5198 = vmatpush3.bf16.msra.mxu1 %v5597_v20  ;;  %5213 = vmatprep.mubr.msk.bf16.mxu1 %vm5957_vm2, %v5956_v24 }
 0x2de   :  { %5199 = vmatprep.subr.bf16.mxu1 %v5956_v24 }
 0x2e1   :  { %v5643_v23 = vpop.eup %5642  ;;  %5200 = vmatpush3.bf16.msra.mxu1 %v5601_v22  ;;  %v4721_v22 = vld [vmem:[#allocation17] ss:$0 sm:$0xff] }
 0x2e2   :  { %v3335_v26 = vadd.f32 1.0, %v5643_v23  ;;  %5201 = vmatprep.subr.bf16.mxu1 %v5956_v24 }
 0x2e4   :  { %5644 = vrcp.f32 %v3335_v26 }
 0x2e5   :  { %5202 = vmatpush3.bf16.msra.mxu1 %v5605_v25 }
 0x2e6   :  { %5203 = vmatprep.subr.bf16.mxu1 %v5956_v24 }
 0x2e9   :  { %5204 = vmatpush3.bf16.msra.mxu1 %v5609_v35 }
 0x2ea   :  { %5205 = vmatprep.subr.bf16.mxu1 %v5956_v24 }
 0x2ed   :  { %5206 = vmatpush3.bf16.msra.mxu1 %v5613_v27 }
 0x2ee   :  { %v5645_v29 = vpop.eup %5644  ;;  %5207 = vmatprep.subr.bf16.mxu1 %v5956_v24 }
 0x2ef   :  { %v3338_v31 = vmul.f32 %v5645_v29, %v3153_v11 }
 0x2f1   :  { %v3339_v32 = vpack.c.bf16 %v3338_v31, %v3338_v31  ;;  %5208 = vmatpush3.bf16.msra.mxu1 %v5617_v28 }
 0x2f2   :  { %5209 = vmatprep.subr.bf16.mxu1 %v5956_v24 }
 0x2f3   :  { %3550 = vmatmul.mubr.bf16.vlgmr.msra.gmra.mrb[36].mxu0 %v3339_v32 }
 0x2f4   :  { %5221 = vmatprep.mubr.msk.bf16.mxu0 %vm5957_vm2, %v5956_v24  ;;  %5218 = vmatpush3.bf16.msra.mxu0 %v5620_v2 }
 0x2f5   :  { %5210 = vmatpush3.bf16.msra.mxu1 %v5618_v33  ;;  %5219 = vmatprep.subr.bf16.mxu0 %v5956_v24 }
 0x2f6   :  { %5211 = vmatprep.subr.bf16.mxu1 %v5956_v24 }
 0x2f8   :  { %5220 = vmatpush3.bf16.msra.mxu0 %v5621_v3 }
 0x2f9   :  { %5212 = vmatpush3.bf16.msra.mxu1 %v5619_v34  ;;  %5225 = vmatprep.subr.bf16.mxu0 %v5956_v24 }
 0x2fa   :  { %5253 = vmatprep.subr.bf16.mxu1 %v5956_v24 }
 0x2fc   :  { %5214 = vmatmul.mubr.bf16.vlgmr.msra.gmra.mrb[36].mxu1 %v3339_v32 }
 0x2fd   :  { %5257 = vmatprep.mubr.msk.bf16.mxu1 %vm5957_vm2, %v5956_v24 }
 0x3af   :  { %v3326_v37 = vpop.f32.mrb[32].mxu1 }
 0x3b0   :  { %v6448_v38 = vadd.f32 %v4683_v36, %v3326_v37  ;;  %v5195_v39 = vpop.f32.mrb[33].mxu1 }
 0x3b1   :  { %v3329_v40 = vpop.f32.mrb[34].mxu1 }
 0x3b2   :  { %v5196_v41 = vpop.f32.mrb[35].mxu1  ;;  %v3599_v42 = vsel %vm3598_vm4, %v6448_v38, 0.0 }
 0x3b3   :  { %3600 = vadd.xlane.f32.xlu0 %v3599_v42  ;;  %v5624_v41 = vld [vmem:[#allocation19] sm:$0xff]  }
 0x3c6   :  { %v3551_v48 = vpop.f32.mrb[36].mxu0 }
 0x3c7   :  { %v6454_v49 = vadd.f32 %v3551_v48, %v3377_v46  ;;  %v3553_v50 = vpop.f32.mrb[37].mxu0 }
 0x3c8   :  { %v6456_v51 = vadd.f32 %v3553_v50, %v3381_v47  ;;  %v3555_v52 = vpop.f32.mrb[38].mxu0 }
 0x3c9   :  { %v3556_v54 = vpop.f32.mrb[39].mxu0  ;;  %v3613_v55 = vadd.f32 1.0, %v6454_v49 }
 0x3ca   :  { %v3778_v46 = vadd.f32 1.0, %v6456_v51  ;;  %v5627_v54 = vld [vmem:[%s6609_s16 + $0x8] sm:$0xff]  }
 0x3cb   :  { %3615 = vrot.lane.b32.xlu1 %v3613_v55, %s5959_s8  ;;  %v5628_v55 = vld [vmem:[%s6609_s16 + $0x10] sm:$0xff]  }
 0x3cf   :  { %v3592_v57 = vpop.f32.mrb[36].mxu1 }
 0x3d0   :  { %v6461_v58 = vadd.f32 %v3592_v57, %v3385_v56  ;;  %v5215_v59 = vpop.f32.mrb[37].mxu1  ;;  %v5629_v56 = vld [vmem:[%s6609_s16 + $0x18] sm:$0xff]   ;;  %v4725_v57 = vld [vmem:[#allocation20] ss:$0 sm:$0xff] }
 0x3d1   :  { %v3595_v60 = vpop.f32.mrb[38].mxu1 }
 0x3d2   :  { %v5216_v61 = vpop.f32.mrb[39].mxu1 }
 0x43d   :  { %v3616_v9 = vpop.permute.xlu1 %3615 }
 0x440   :  { %v3601_v62 = vpop.xlane.xlu0 %3600 }
 0x441   :  { %v3603_v63 = vmul.f32 0.03125, %v3601_v62 }
 0x443   :  { %v3604_v0 = vsub.f32 %v6448_v38, %v3603_v63 }
 0x445   :  { %v3605_v1 = vmul.f32 %v3604_v0, %v3604_v0 }
 0x447   :  { %v3606_v30 = vsel %vm3598_vm4, %v3605_v1, 0.0 }
 0x448   :  { %3607 = vadd.xlane.f32.xlu0 %v3606_v30 }
 0x4d5   :  { %v3608_v4 = vpop.xlane.xlu0 %3607 }
 0x4d6   :  { %v3609_v5 = vmul.f32 0.03125, %v3608_v4 }
 0x4d8   :  { %v3610_v6 = vadd.f32 1e-06, %v3609_v5 }
 0x4da   :  { %5646 = vrsqrt.f32 %v3610_v6 }
 0x4e4   :  { %v5647_v7 = vpop.eup %5646 }
 0x4e5   :  { %v3612_v8 = vmul.f32 %v5647_v7, %v3604_v0 }
 0x4e7   :  { %v3618_v10 = vmul.f32 %v3616_v9, %v3612_v8  ;;  %v4729_v9 = vld [vmem:[%s6610_s17] ss:$0 sm:$0xff] }
 0x4e9   :  { %v3619_v11 = vadd.f32 %v3618_v10, %v6454_v49 }
 0x4eb   :  { %v3620_v13 = vpack.c.bf16 %v3619_v11, %v3619_v11 }
 0x4ed   :  { %5222 = vmatmul.mubr.msk.bf16.vlgmr.msra.gmra.mrb[40].mxu0 %vm3644_vm5, %v3620_v13 }
 0x4ee   :  { %5226 = vmatpush3.bf16.msra.mxu0 %v5622_v12  ;;  %5229 = vmatprep.mubr.msk.bf16.mxu0 %vm5957_vm2, %v5956_v24 }
 0x4ef   :  { %5227 = vmatprep.subr.bf16.mxu0 %v5956_v24 }
 0x4f2   :  { %5228 = vmatpush3.bf16.msra.mxu0 %v5623_v14 }
 0x4f3   :  { %5233 = vmatprep.subr.bf16.mxu0 %v5956_v24 }
 0x5c0   :  { %v3682_v16 = vpop.f32.mrb[40].mxu0 }
 0x5c1   :  { %v3683_v17 = vadd.f32 %v4717_v15, %v3682_v16  ;;  %v5223_v18 = vpop.f32.mrb[41].mxu0 }
 0x5c2   :  { %v3685_v19 = vpop.f32.mrb[42].mxu0 }
 0x5c3   :  { %v3688_v20 = vpack.c.bf16 %v3683_v17, %v3683_v17  ;;  %v5224_v21 = vpop.f32.mrb[43].mxu0 }
 0x5c5   :  { %5230 = vmatmul.mubr.msk.bf16.vlgmr.msra.gmra.mrb[44].mxu0 %vm3644_vm5, %v3688_v20 }
 0x5c6   :  { %5237 = vmatprep.mubr.msk.bf16.mxu0 %vm5957_vm2, %v5956_v24  ;;  %5234 = vmatpush3.bf16.msra.mxu0 %v5624_v41  ;;  %v4735_v41 = vld [vmem:[#allocation14 + $0x1] ss:$0 sm:$0xff] }
 0x5c7   :  { %5235 = vmatprep.subr.bf16.mxu0 %v5956_v24 }
 0x698   :  { %v3749_v23 = vpop.f32.mrb[44].mxu0 }
 0x699   :  { %v3750_v25 = vadd.f32 %v4721_v22, %v3749_v23  ;;  %v5231_v26 = vpop.f32.mrb[45].mxu0 }
 0x69a   :  { %v3752_v35 = vpop.f32.mrb[46].mxu0  ;;  %v5630_v26 = vld [vmem:[#allocation13 + $0x10] sm:$0xff]  }
 0x69b   :  { %3756 = vrot.lane.b32.xlu1 %v3750_v25, %s5939_s26  ;;  %v5232_v27 = vpop.f32.mrb[47].mxu0  ;;  %5254 = vmatpush3.bf16.msra.mxu1 %v5630_v26  ;;  %v5631_v35 = vld [vmem:[#allocation13 + $0x18] sm:$0xff]  }
 0x69c   :  { %5255 = vmatprep.subr.bf16.mxu1 %v5956_v24 }
 0x69f   :  { %5256 = vmatpush3.bf16.msra.mxu1 %v5631_v35 }
 0x6a0   :  { %5261 = vmatprep.subr.bf16.mxu1 %v5956_v24 }
 0x70d   :  { %v3757_v28 = vpop.permute.xlu1 %3756 }
 0x70e   :  { %v3759_v29 = vmul.f32 %v3757_v28, %v6454_v49 }
 0x710   :  { %3761 = vrot.lane.b32.xlu0 %v3759_v29, %s5939_s26 }
 0x782   :  { %v3762_v31 = vpop.permute.xlu0 %3761 }
 0x783   :  { %v6480_v32 = vadd.f32 %v3762_v31, %v6448_v38  ;;  %v5625_v38 = vld [vmem:[#allocation19 + $0x8] sm:$0xff]  }
 0x784   :  { %5236 = vmatpush3.bf16.msra.mxu0 %v5625_v38 }
 0x785   :  { %v3765_v33 = vsel %vm3598_vm4, %v6480_v32, 0.0  ;;  %5241 = vmatprep.subr.bf16.mxu0 %v5956_v24 }
 0x786   :  { %3766 = vadd.xlane.f32.xlu1 %v3765_v33 }
 0x797   :  { %3781 = vrot.lane.b32.xlu1 %v6454_v49, %s5960_s0 }
 0x813   :  { %v3767_v34 = vpop.xlane.xlu1 %3766 }
 0x814   :  { %v3768_v36 = vmul.f32 0.03125, %v3767_v34 }
 0x816   :  { %v3769_v37 = vsub.f32 %v6480_v32, %v3768_v36 }
 0x817   :  { %v3782_v49 = vpop.permute.xlu1 %3781 }
 0x818   :  { %v3770_v39 = vmul.f32 %v3769_v37, %v3769_v37 }
 0x81a   :  { %v3771_v40 = vsel %vm3598_vm4, %v3770_v39, 0.0  ;;  %v5632_v39 = vld [vmem:[#allocation16 + $0x10] sm:$0xff]  }
 0x81b   :  { %3772 = vadd.xlane.f32.xlu0 %v3771_v40  ;;  %v5633_v40 = vld [vmem:[#allocation16 + $0x18] sm:$0xff]  }
 0x8a8   :  { %v3773_v42 = vpop.xlane.xlu0 %3772 }
 0x8a9   :  { %v3774_v43 = vmul.f32 0.03125, %v3773_v42 }
 0x8ab   :  { %v3775_v44 = vadd.f32 1e-06, %v3774_v43 }
 0x8ad   :  { %5648 = vrsqrt.f32 %v3775_v44 }
 0x8b7   :  { %v5649_v45 = vpop.eup %5648 }
 0x8b8   :  { %v3777_v47 = vmul.f32 %v5649_v45, %v3769_v37 }
 0x8ba   :  { %v3779_v48 = vmul.f32 %v3778_v46, %v3777_v47  ;;  %v4739_v47 = vld [vmem:[#allocation17 + $0x1] ss:$0 sm:$0xff] }
 0x8bc   :  { %v3784_v50 = vadd.f32 %v3782_v49, %v3779_v48 }
 0x8be   :  { %v3785_v52 = vpack.c.bf16 %v3784_v50, %v3784_v50 }
 0x8c0   :  { %5238 = vmatmul.mubr.msk.bf16.vlgmr.msra.gmra.mrb[48].mxu0 %vm3644_vm5, %v3785_v52 }
 0x8c1   :  { %5249 = vmatprep.mubr.msk.bf16.mxu0 %vm5957_vm2, %v5956_v24  ;;  %5242 = vmatpush3.bf16.msra.mxu0 %v5626_v53 }
 0x8c2   :  { %5243 = vmatprep.subr.bf16.mxu0 %v5956_v24 }
 0x8c5   :  { %5244 = vmatpush3.bf16.msra.mxu0 %v5627_v54 }
 0x8c6   :  { %5245 = vmatprep.subr.bf16.mxu0 %v5956_v24 }
 0x8c9   :  { %5246 = vmatpush3.bf16.msra.mxu0 %v5628_v55 }
 0x8ca   :  { %5247 = vmatprep.subr.bf16.mxu0 %v5956_v24 }
 0x8cd   :  { %5248 = vmatpush3.bf16.msra.mxu0 %v5629_v56 }
 0x8ce   :  { %5269 = vmatprep.subr.bf16.mxu0 %v5956_v24 }
 0x993   :  { %v3846_v59 = vpop.f32.mrb[48].mxu0 }
 0x994   :  { %v3847_v60 = vadd.f32 %v4725_v57, %v3846_v59  ;;  %v5239_v61 = vpop.f32.mrb[49].mxu0  ;;  %v4131_v57 = vadd.f32 1.0, %v6461_v58 }
 0x995   :  { %v3849_v62 = vpop.f32.mrb[50].mxu0 }
 0x996   :  { %v3852_v63 = vmul.f32 %v3847_v60, %v3847_v60  ;;  %v5240_v0 = vpop.f32.mrb[51].mxu0 }
 0x997   :  { %v5634_v0 = vld [vmem:[#allocation19 + $0x10] sm:$0xff]  }
 0x998   :  { %v3853_v1 = vmul.f32 %v3852_v63, %v3847_v60 }
 0x99a   :  { %v3854_v30 = vmul.f32 0.044715, %v3853_v1  ;;  %v5635_v1 = vld [vmem:[#allocation19 + $0x18] sm:$0xff]  }
 0x99c   :  { %v3855_v2 = vadd.f32 %v3854_v30, %v3847_v60 }
 0x99e   :  { %v3856_v3 = vmul.f32 0.7978846, %v3855_v2 }
 0x9a0   :  { %5650 = vtanh.f32 %v3856_v3 }
 0x9aa   :  { %v5651_v4 = vpop.eup %5650 }
 0x9ab   :  { %v3858_v5 = vadd.f32 1.0, %v5651_v4 }
 0x9ad   :  { %v3859_v6 = vmul.f32 0.5, %v3858_v5 }
 0x9af   :  { %v3860_v7 = vmul.f32 %v3859_v6, %v3847_v60 }
 0x9b1   :  { %v3861_v8 = vpack.c.bf16 %v3860_v7, %v3860_v7 }
 0x9b3   :  { %5250 = vmatmul.mubr.msk.bf16.vlgmr.msra.gmra.mrb[52].mxu0 %vm3901_vm6, %v3861_v8 }
 0x9b4   :  { %5273 = vmatprep.mubr.msk.bf16.mxu0 %vm5957_vm2, %v5956_v24  ;;  %5270 = vmatpush3.bf16.msra.mxu0 %v5634_v0 }
 0x9b5   :  { %5271 = vmatprep.subr.bf16.mxu0 %v5956_v24 }
 0x9b8   :  { %5272 = vmatpush3.bf16.msra.mxu0 %v5635_v1 }
 0x9b9   :  { %5289 = vmatprep.subr.bf16.mxu0 %v5956_v24 }
 0xa86   :  { %v3939_v10 = vpop.f32.mrb[52].mxu0 }
 0xa87   :  { %v3940_v11 = vadd.f32 %v4729_v9, %v3939_v10  ;;  %v5251_v12 = vpop.f32.mrb[53].mxu0 }
 0xa88   :  { %v3942_v13 = vpop.f32.mrb[54].mxu0  ;;  %v5637_v12 = vld [vmem:[%s6609_s16 + $0x28] sm:$0xff]  }
 0xa89   :  { %3946 = vrot.lane.b32.xlu0 %v3940_v11, %s5960_s0  ;;  %v5252_v14 = vpop.f32.mrb[55].mxu0  ;;  %v5636_v11 = vld [vmem:[%s6609_s16 + $0x20] sm:$0xff]   ;;  %v5638_v13 = vld [vmem:[%s6609_s16 + $0x30] sm:$0xff]  }
 0xa8a   :  { %v5639_v14 = vld [vmem:[%s6609_s16 + $0x38] sm:$0xff]  }
 0xafb   :  { %v3947_v15 = vpop.permute.xlu0 %3946 }
 0xafc   :  { %v3949_v16 = vmul.f32 %v3947_v15, %v6456_v51  ;;  %v4743_v15 = vld [vmem:[#allocation20 + $0x1] ss:$0 sm:$0xff] }
 0xafe   :  { %3951 = vrot.lane.b32.xlu1 %v3949_v16, %s5959_s8 }
 0xb70   :  { %v3952_v17 = vpop.permute.xlu1 %3951 }
 0xb71   :  { %v3954_v18 = vadd.f32 %v3952_v17, %v6480_v32 }
 0xb73   :  { %v3955_v19 = vsel %vm3598_vm4, %v3954_v18, 0.0 }
 0xb74   :  { %3956 = vadd.xlane.f32.xlu1 %v3955_v19 }
 0xb85   :  { %3969 = vrot.lane.b32.xlu1 %v3778_v46, %s5960_s0 }
 0xc01   :  { %v3957_v20 = vpop.xlane.xlu1 %3956 }
 0xc02   :  { %v3958_v21 = vmul.f32 0.03125, %v3957_v20 }
 0xc04   :  { %v3959_v22 = vsub.f32 %v3954_v18, %v3958_v21 }
 0xc05   :  { %v3970_v33 = vpop.permute.xlu1 %3969 }
 0xc06   :  { %v3960_v23 = vmul.f32 %v3959_v22, %v3959_v22 }
 0xc08   :  { %v3961_v25 = vsel %vm3598_vm4, %v3960_v23, 0.0 }
 0xc09   :  { %3962 = vadd.xlane.f32.xlu0 %v3961_v25 }
 0xc1f   :  { %3974 = vrot.lane.b32.xlu0 %v6456_v51, %s5939_s26 }
 0xc96   :  { %v3963_v27 = vpop.xlane.xlu0 %3962 }
 0xc97   :  { %v3964_v28 = vmul.f32 0.03125, %v3963_v27 }
 0xc99   :  { %v3965_v29 = vadd.f32 1e-06, %v3964_v28 }
 0xc9a   :  { %v3975_v36 = vpop.permute.xlu0 %3974 }
 0xc9b   :  { %5652 = vrsqrt.f32 %v3965_v29 }
 0xca5   :  { %v5653_v31 = vpop.eup %5652 }
 0xca6   :  { %v3967_v32 = vmul.f32 %v5653_v31, %v3959_v22 }
 0xca8   :  { %v3972_v34 = vmul.f32 %v3970_v33, %v3967_v32  ;;  %v4756_v32 = vld [vmem:[%s6610_s17 + $0x1] ss:$0 sm:$0xff] }
 0xcaa   :  { %v3977_v37 = vadd.f32 %v3975_v36, %v3972_v34 }
 0xcac   :  { %v3978_v51 = vpack.c.bf16 %v3977_v37, %v3977_v37 }
 0xcae   :  { %5258 = vmatmul.mubr.msk.bf16.vlgmr.msra.gmra.mrb[40].mxu1 %vm3644_vm5, %v3978_v51 }
 0xcaf   :  { %5262 = vmatpush3.bf16.msra.mxu1 %v5632_v39  ;;  %5265 = vmatprep.mubr.msk.bf16.mxu1 %vm5957_vm2, %v5956_v24 }
 0xcb0   :  { %5263 = vmatprep.subr.bf16.mxu1 %v5956_v24 }
 0xcb3   :  { %5264 = vmatpush3.bf16.msra.mxu1 %v5633_v40 }
 0xcb4   :  { %5277 = vmatprep.subr.bf16.mxu1 %v5956_v24 }
 0xd81   :  { %v4041_v38 = vpop.f32.mrb[40].mxu1 }
 0xd82   :  { %v4042_v42 = vadd.f32 %v4735_v41, %v4041_v38  ;;  %v5259_v43 = vpop.f32.mrb[41].mxu1 }
 0xd83   :  { %v4044_v44 = vpop.f32.mrb[42].mxu1 }
 0xd84   :  { %v4047_v45 = vpack.c.bf16 %v4042_v42, %v4042_v42  ;;  %v5260_v46 = vpop.f32.mrb[43].mxu1 }
 0xd86   :  { %5266 = vmatmul.mubr.msk.bf16.vlgmr.msra.gmra.mrb[44].mxu1 %vm3644_vm5, %v4047_v45 }
 0xd87   :  { %5285 = vmatprep.mubr.msk.bf16.mxu1 %vm5957_vm2, %v5956_v24  ;;  %5278 = vmatpush3.bf16.msra.mxu1 %v5636_v11 }
 0xd88   :  { %5279 = vmatprep.subr.bf16.mxu1 %v5956_v24 }
 0xd8b   :  { %5280 = vmatpush3.bf16.msra.mxu1 %v5637_v12 }
 0xd8c   :  { %5281 = vmatprep.subr.bf16.mxu1 %v5956_v24 }
 0xd8f   :  { %5282 = vmatpush3.bf16.msra.mxu1 %v5638_v13 }
 0xd90   :  { %5283 = vmatprep.subr.bf16.mxu1 %v5956_v24 }
 0xd93   :  { %5284 = vmatpush3.bf16.msra.mxu1 %v5639_v14 }
 0xe59   :  { %v4110_v48 = vpop.f32.mrb[44].mxu1 }
 0xe5a   :  { %v4111_v49 = vadd.f32 %v4739_v47, %v4110_v48  ;;  %v5267_v50 = vpop.f32.mrb[45].mxu1  ;;  %v5640_v48 = vld [vmem:[%s6613_s20] sm:$0xff]  }
 0xe5b   :  { %v4113_v52 = vpop.f32.mrb[46].mxu1 }
 0xe5c   :  { %v4116_v53 = vmul.f32 %v4111_v49, %v6461_v58  ;;  %v5268_v54 = vpop.f32.mrb[47].mxu1 }
 0xe5d   :  { %v4762_v54 = vld [vmem:[%s6611_s18] ss:$0 sm:$0xff] }
 0xe5e   :  { %v6536_v55 = vadd.f32 %v4116_v53, %v3954_v18 }
 0xe60   :  { %v4118_v56 = vsel %vm3598_vm4, %v6536_v55, 0.0 }
 0xe61   :  { %4119 = vadd.xlane.f32.xlu1 %v4118_v56 }
 0xe72   :  { %4133 = vrot.lane.b32.xlu1 %v4131_v57, %s5939_s26 }
 0xeee   :  { %v4120_v59 = vpop.xlane.xlu1 %4119 }
 0xeef   :  { %v4121_v60 = vmul.f32 0.03125, %v4120_v59 }
 0xef1   :  { %v4122_v61 = vsub.f32 %v6536_v55, %v4121_v60 }
 0xef2   :  { %v4134_v6 = vpop.permute.xlu1 %4133 }
 0xef3   :  { %v4123_v62 = vmul.f32 %v4122_v61, %v4122_v61 }
 0xef5   :  { %v4124_v63 = vsel %vm3598_vm4, %v4123_v62, 0.0 }
 0xef6   :  { %4125 = vadd.xlane.f32.xlu0 %v4124_v63 }
 0xf0c   :  { %4138 = vrot.lane.b32.xlu0 %v6461_v58, %s5959_s8 }
 0xf83   :  { %v4126_v30 = vpop.xlane.xlu0 %4125 }
 0xf84   :  { %v4127_v2 = vmul.f32 0.03125, %v4126_v30 }
 0xf86   :  { %v4128_v3 = vadd.f32 1e-06, %v4127_v2 }
 0xf87   :  { %v4139_v8 = vpop.permute.xlu0 %4138 }
 0xf88   :  { %5654 = vrsqrt.f32 %v4128_v3 }
 0xf92   :  { %v5655_v4 = vpop.eup %5654 }
 0xf93   :  { %v4130_v5 = vmul.f32 %v5655_v4, %v4122_v61 }
 0xf95   :  { %v4136_v7 = vmul.f32 %v4134_v6, %v4130_v5 }
 0xf97   :  { %v4141_v9 = vadd.f32 %v4139_v8, %v4136_v7 }
 0xf99   :  { %v4142_v10 = vpack.c.bf16 %v4141_v9, %v4141_v9 }
 0xf9b   :  { %5274 = vmatmul.mubr.msk.bf16.vlgmr.msra.gmra.mrb[56].mxu0 %vm3644_vm5, %v4142_v10 }
 0xf9c   :  { %5293 = vmatprep.mubr.msk.bf16.mxu0 %vm5957_vm2, %v5956_v24  ;;  %5290 = vmatpush3.bf16.msra.mxu0 %v5640_v48 }
 0xf9d   :  { %5291 = vmatprep.subr.bf16.mxu0 %v5956_v24  ;;  %v4764_v24 = vld [vmem:[#allocation2] ss:$0 sm:$0xff] }
0x106e   :  { %v4205_v16 = vpop.f32.mrb[56].mxu0 }
0x106f   :  { %v4206_v17 = vadd.f32 %v4743_v15, %v4205_v16  ;;  %v5275_v18 = vpop.f32.mrb[57].mxu0 }
0x1070   :  { %v4208_v19 = vpop.f32.mrb[58].mxu0 }
0x1071   :  { %v4211_v20 = vmul.f32 %v4206_v17, %v4206_v17  ;;  %v5276_v21 = vpop.f32.mrb[59].mxu0 }
0x1073   :  { %v4212_v22 = vmul.f32 %v4211_v20, %v4206_v17 }
0x1075   :  { %v4213_v23 = vmul.f32 0.044715, %v4212_v22 }
0x1077   :  { %v4214_v25 = vadd.f32 %v4213_v23, %v4206_v17 }
0x1079   :  { %v4215_v26 = vmul.f32 0.7978846, %v4214_v25 }
0x107b   :  { %5656 = vtanh.f32 %v4215_v26 }
0x1085   :  { %v5657_v35 = vpop.eup %5656 }
0x1086   :  { %v4217_v27 = vadd.f32 1.0, %v5657_v35 }
0x1088   :  { %v4218_v28 = vmul.f32 0.5, %v4217_v27 }
0x108a   :  { %v4219_v29 = vmul.f32 %v4218_v28, %v4206_v17 }
0x108c   :  { %v4220_v31 = vpack.c.bf16 %v4219_v29, %v4219_v29 }
0x108e   :  { %5286 = vmatmul.mubr.msk.bf16.vlgmr.msra.gmra.mrb[48].mxu1 %vm3901_vm6, %v4220_v31 }
0x1161   :  { %v4299_v33 = vpop.f32.mrb[48].mxu1 }
0x1162   :  { %v4300_v34 = vadd.f32 %v4756_v32, %v4299_v33  ;;  %v5287_v36 = vpop.f32.mrb[49].mxu1 }
0x1163   :  { %v4302_v37 = vpop.f32.mrb[50].mxu1 }
0x1164   :  { %4306 = vrot.lane.b32.xlu1 %v4300_v34, %s5959_s8  ;;  %v5288_v39 = vpop.f32.mrb[51].mxu1 }
0x11d6   :  { %v4307_v51 = vpop.permute.xlu1 %4306 }
0x11d7   :  { %v4309_v40 = vmul.f32 %v4307_v51, %v6461_v58  ;;  %v5641_v58 = vld [vmem:[%s6613_s20 + $0x8] sm:$0xff]  }
0x11d8   :  { %5292 = vmatpush3.bf16.msra.mxu0 %v5641_v58 }
0x11d9   :  { %4311 = vrot.lane.b32.xlu1 %v4309_v40, %s5960_s0  ;;  %s6638_s0 = sld [smem:[#allocation36_spill]] }
0x11df   :  { %v4763_v56 = vld [vmem:[%s6638_s0] ss:$0 sm:$0xff] }
0x124b   :  { %v4312_v41 = vpop.permute.xlu1 %4311 }
0x124c   :  { %v4314_v38 = vadd.f32 %v4312_v41, %v6536_v55 }
0x124e   :  { %v4317_v42 = vsel %vm3598_vm4, %v4314_v38, 0.0 }
0x124f   :  { %4318 = vadd.xlane.f32.xlu1 %v4317_v42 }
0x12dc   :  { %v4319_v43 = vpop.xlane.xlu1 %4318 }
0x12dd   :  { %v4320_v44 = vmul.f32 0.03125, %v4319_v43 }
0x12df   :  { %v4321_v45 = vsub.f32 %v4314_v38, %v4320_v44 }
0x12e1   :  { %v4322_v46 = vmul.f32 %v4321_v45, %v4321_v45 }
0x12e3   :  { %v4323_v47 = vsel %vm3598_vm4, %v4322_v46, 0.0 }
0x12e4   :  { %4324 = vadd.xlane.f32.xlu0 %v4323_v47 }
0x1371   :  { %v4325_v49 = vpop.xlane.xlu0 %4324 }
0x1372   :  { %v4326_v50 = vmul.f32 0.03125, %v4325_v49 }
0x1374   :  { %v4327_v52 = vadd.f32 1e-05, %v4326_v50 }
0x1376   :  { %5658 = vrsqrt.f32 %v4327_v52 }
0x1380   :  { %v5659_v53 = vpop.eup %5658 }
0x1381   :  { %v4329_v55 = vmul.f32 %v5659_v53, %v4321_v45 }
0x1383   :  { %v4336_v57 = vmul.f32 %v4762_v54, %v4329_v55 }
0x1385   :  { %v4343_v59 = vadd.f32 %v4763_v56, %v4336_v57 }
0x1387   :  { %v4344_v60 = vpack.c.bf16 %v4343_v59, %v4343_v59 }
0x1389   :  { %5294 = vmatmul.mubr.msk.bf16.vlgmr.msra.gmra.mrb[60].mxu0 %vm3644_vm5, %v4344_v60 }
0x145c   :  { %v4405_v61 = vpop.f32.mrb[60].mxu0 }
0x145d   :  { %v4406_v62 = vadd.f32 %v4764_v24, %v4405_v61  ;;  %v5295_v63 = vpop.f32.mrb[61].mxu0 }
0x145e   :  { %v4408_v0 = vpop.f32.mrb[62].mxu0 }
0x145f   :  { %4412 = vst.msk [vmem:[%s6639_s5] sm:$0x3] %vm4411_vm7, %v4406_v62  ;;  %v5296_v1 = vpop.f32.mrb[63].mxu0 }
0x1460   :  { %4417 = vsyncpa [#allocation4], 1 }
0x1461   :  { %4418 = vsyncpa [#allocation6], 1 }
0x1462   :  { %4419 = vsyncpa [#allocation9], 1 }
0x1463   :  { %4420 = vsyncpa [#allocation12], 1 }
0x1464   :  { %4421 = vsyncpa [#allocation15], 1 }
0x1465   :  { %4422 = vsyncpa [#allocation18], 1 }
0x1466   :  { %4423 = vsyncpa [#allocation21], 1 }

</bundles_post_ra>
